<compile_context>
chip_gen: v6e
topology: v6e:2x2x1
jax: 0.10.0
libtpu: 0.0.40
codegen_flags: <defaults>
</compile_context>

<pallas_src>
import functools

import numpy as np
import jax
import jax.numpy as jnp
from jax import lax
from jax.experimental import pallas as pl
from jax.experimental.pallas import tpu as pltpu


# ---------------------------------------------------------------------------
# Kernel A: 1x1 conv + BN + ReLU (in VMEM) fused with GAP accumulation and the
#           squeeze/excite MLP + sigmoid finalize.  Emits only the two gates.
# ---------------------------------------------------------------------------

def _gates_kernel(xh_ref, xl_ref,
                  fhw_ref, fhb_ref,
                  tdw1_ref, tdb1_ref, tdw2_ref, tdb2_ref,
                  buw1_ref, bub1_ref, buw2_ref, bub2_ref,
                  td_ref, bu_ref,
                  sum_hf_ref, sum_xl_ref, *, inv_hw):
    m = pl.program_id(1)

    @pl.when(m == 0)
    def _():
        sum_hf_ref[...] = jnp.zeros_like(sum_hf_ref)
        sum_xl_ref[...] = jnp.zeros_like(sum_xl_ref)

    # 1x1 conv as bf16 MXU matmul with f32 accumulation, folded BN + ReLU.
    feat = jnp.dot(xh_ref[0], fhw_ref[...],
                   preferred_element_type=jnp.float32)          # [tm, C] f32
    feat = jnp.maximum(feat + fhb_ref[...], 0.0)

    # GAP partial sums (f32) for both attention branches (feat stays in VMEM).
    sum_hf_ref[...] += jnp.sum(feat, axis=0, keepdims=True)
    sum_xl_ref[...] += jnp.sum(xl_ref[0].astype(jnp.float32), axis=0,
                               keepdims=True)

    # Finalize once per batch element: SE MLP + sigmoid, with the 2x fuse scale
    # folded in so Kernel B's per-pixel path avoids the multiplies.
    @pl.when(m == pl.num_programs(1) - 1)
    def _():
        def mlp_gate(pooled, w1, b1, w2, b2):
            h = jnp.dot(pooled.astype(jnp.bfloat16), w1,
                        preferred_element_type=jnp.float32) + b1
            h = jnp.maximum(h, 0.0).astype(jnp.bfloat16)
            z = jnp.dot(h, w2, preferred_element_type=jnp.float32) + b2
            return 2.0 / (1.0 + jnp.exp(-z))                    # [1, C] f32

        td_ref[0] = mlp_gate(sum_hf_ref[...] * inv_hw,
                             tdw1_ref[...], tdb1_ref[...],
                             tdw2_ref[...], tdb2_ref[...])
        bu_ref[0] = mlp_gate(sum_xl_ref[...] * inv_hw,
                             buw1_ref[...], bub1_ref[...],
                             buw2_ref[...], bub2_ref[...])


def _pick_spatial_tile(hw, target=2048):
    """Largest tile <= target that divides hw and is 8-aligned (or hw itself)."""
    if hw <= target:
        return hw
    for t in range((target // 8) * 8, 0, -8):
        if hw % t == 0:
            return t
    # TODO(synk): fall back to masked remainder tiles instead of one huge tile.
    return hw


def attention_gates(xh_rows, xl_rows, params):
    N, HW, C_high = xh_rows.shape
    C = xl_rows.shape[-1]
    Cb = params["td_w1"].shape[1]
    tm = _pick_spatial_tile(HW)
    n_m = HW // tm

    const2 = lambda n, m: (0, 0)
    kernel = functools.partial(_gates_kernel, inv_hw=1.0 / float(HW))
    return pl.pallas_call(
        kernel,
        out_shape=(jax.ShapeDtypeStruct((N, 1, C), jnp.float32),
                   jax.ShapeDtypeStruct((N, 1, C), jnp.float32)),
        grid_spec=pltpu.PrefetchScalarGridSpec(
            num_scalar_prefetch=0,
            grid=(N, n_m),
            in_specs=[
                pl.BlockSpec((1, tm, C_high), lambda n, m: (n, m, 0)),
                pl.BlockSpec((1, tm, C), lambda n, m: (n, m, 0)),
                pl.BlockSpec((C_high, C), const2),
                pl.BlockSpec((1, C), const2),
                pl.BlockSpec((C, Cb), const2),
                pl.BlockSpec((1, Cb), const2),
                pl.BlockSpec((Cb, C), const2),
                pl.BlockSpec((1, C), const2),
                pl.BlockSpec((C, Cb), const2),
                pl.BlockSpec((1, Cb), const2),
                pl.BlockSpec((Cb, C), const2),
                pl.BlockSpec((1, C), const2),
            ],
            out_specs=[
                pl.BlockSpec((1, 1, C), lambda n, m: (n, 0, 0)),
                pl.BlockSpec((1, 1, C), lambda n, m: (n, 0, 0)),
            ],
            scratch_shapes=[pltpu.VMEM((1, C), jnp.float32),
                            pltpu.VMEM((1, C), jnp.float32)],
        ),
        compiler_params=pltpu.CompilerParams(
            dimension_semantics=("parallel", "arbitrary")),
    )(xh_rows, xl_rows,
      params["fh_w"], params["fh_b"],
      params["td_w1"], params["td_b1"], params["td_w2"], params["td_b2"],
      params["bu_w1"], params["bu_b1"], params["bu_w2"], params["bu_b2"])


# ---------------------------------------------------------------------------
# Kernel B: recompute cheap 1x1 conv, fuse in VMEM, 3x3 conv as 9 accumulated
#           bf16 matmuls (no HBM im2col, xs never materialized in HBM).
# ---------------------------------------------------------------------------

def _fuse_post_kernel(xl_ref, xh_ref, td_ref, bu_ref,
                      fhw_ref, fhb_ref, w_ref, b_ref, o_ref):
    _, H, W, C = xl_ref.shape
    C_high = xh_ref.shape[-1]

    # Recompute feature_high (1x1 conv + BN + ReLU); K = C_high is tiny.
    xh = xh_ref[0].reshape(H * W, C_high)                        # bf16
    feat = jnp.dot(xh, fhw_ref[...], preferred_element_type=jnp.float32)
    feat = jnp.maximum(feat + fhb_ref[...], 0.0)                 # [H*W, C] f32

    td = td_ref[0]                                               # (1, C), has 2x
    bu = bu_ref[0]
    xl = xl_ref[0].reshape(H * W, C).astype(jnp.float32)
    # xs = 2*xl*topdown_wei + 2*xh_feat*bottomup_wei (2x folded into gates).
    xs = (xl * td + feat * bu).astype(jnp.bfloat16)              # early bf16 cast
    xs = xs.reshape(H, W, C)

    # Zero-pad by 1 in H and W, entirely in VMEM, in bf16.
    zr = jnp.zeros((1, W, C), jnp.bfloat16)
    xs_h = jnp.concatenate([zr, xs, zr], axis=0)                 # [H+2, W, C]
    zc = jnp.zeros((H + 2, 1, C), jnp.bfloat16)
    xs_pad = jnp.concatenate([zc, xs_h, zc], axis=1)             # [H+2, W+2, C]

    # 3x3 conv as 9 accumulated [H*W,C] @ [C,C] bf16 matmuls (f32 accumulate).
    def tap(k):
        dy, dx = divmod(k, 3)
        return xs_pad[dy:dy + H, dx:dx + W, :].reshape(H * W, C)

    acc = jnp.dot(tap(0), w_ref[0], preferred_element_type=jnp.float32)
    for k in range(1, 9):
        acc += jnp.dot(tap(k), w_ref[k], preferred_element_type=jnp.float32)

    y = jnp.maximum(acc + b_ref[...], 0.0)
    o_ref[0] = y.reshape(H, W, C)


def fuse_post(xl_nhwc, xh_nhwc, td2, bu2, params):
    N, H, W, C = xl_nhwc.shape
    C_high = xh_nhwc.shape[-1]
    return pl.pallas_call(
        _fuse_post_kernel,
        out_shape=jax.ShapeDtypeStruct((N, H, W, C), jnp.float32),
        grid_spec=pltpu.PrefetchScalarGridSpec(
            num_scalar_prefetch=0,
            grid=(N,),
            in_specs=[
                pl.BlockSpec((1, H, W, C), lambda n: (n, 0, 0, 0)),
                pl.BlockSpec((1, H, W, C_high), lambda n: (n, 0, 0, 0)),
                pl.BlockSpec((1, 1, C), lambda n: (n, 0, 0)),
                pl.BlockSpec((1, 1, C), lambda n: (n, 0, 0)),
                pl.BlockSpec((C_high, C), lambda n: (0, 0)),
                pl.BlockSpec((1, C), lambda n: (0, 0)),
                pl.BlockSpec((9, C, C), lambda n: (0, 0, 0)),
                pl.BlockSpec((1, C), lambda n: (0, 0)),
            ],
            out_specs=pl.BlockSpec((1, H, W, C), lambda n: (n, 0, 0, 0)),
        ),
        compiler_params=pltpu.CompilerParams(
            dimension_semantics=("parallel",),
            vmem_limit_bytes=56 * 1024 * 1024),
    )(xl_nhwc, xh_nhwc, td2, bu2,
      params["fh_w"], params["fh_b"], params["post_w"], params["post_b"])


# ---------------------------------------------------------------------------
# Parameters (deterministic init, BN folded into conv weights/bias, weights
# pre-cast to bf16 outside the kernels; biases stay f32)
# ---------------------------------------------------------------------------

def _fold_bn(w, b, gamma, beta, mean, var, eps=1e-5):
    scale = gamma / jnp.sqrt(var + eps)          # per out-channel (last axis of w)
    return w * scale, (b - mean) * scale + beta


def init_params(key, c_high, c_out, c_bneck):
    keys = list(jax.random.split(key, 48))
    it = iter(keys)

    def conv_bn(shape):
        cout = shape[-1]
        fan_in = int(np.prod(shape[:-1]))
        w = jax.random.normal(next(it), shape, jnp.float32) / np.sqrt(fan_in)
        b = 0.05 * jax.random.normal(next(it), (cout,), jnp.float32)
        gamma = 1.0 + 0.1 * jax.random.normal(next(it), (cout,), jnp.float32)
        beta = 0.1 * jax.random.normal(next(it), (cout,), jnp.float32)
        mean = 0.1 * jax.random.normal(next(it), (cout,), jnp.float32)
        var = 0.5 + 0.2 * jnp.abs(jax.random.normal(next(it), (cout,), jnp.float32))
        wf, bf = _fold_bn(w, b, gamma, beta, mean, var)
        return wf, bf.reshape(1, cout)

    fh_w, fh_b = conv_bn((c_high, c_out))                 # feature_high 1x1
    td_w1, td_b1 = conv_bn((c_out, c_bneck))              # topdown squeeze
    td_w2, td_b2 = conv_bn((c_bneck, c_out))              # topdown excite
    bu_w1, bu_b1 = conv_bn((c_out, c_bneck))              # bottomup squeeze
    bu_w2, bu_b2 = conv_bn((c_bneck, c_out))              # bottomup excite
    pw, pb = conv_bn((3, 3, c_out, c_out))                # post 3x3 (HWIO)

    bf16 = jnp.bfloat16
    return dict(
        fh_w=fh_w.astype(bf16), fh_b=fh_b,
        td_w1=td_w1.astype(bf16), td_b1=td_b1,
        td_w2=td_w2.astype(bf16), td_b2=td_b2,
        bu_w1=bu_w1.astype(bf16), bu_b1=bu_b1,
        bu_w2=bu_w2.astype(bf16), bu_b2=bu_b2,
        post_w=pw.reshape(9, c_out, c_out).astype(bf16),  # [9, C, C] per-tap
        post_b=pb)


# ---------------------------------------------------------------------------
# Full forward (glue + 2 fused Pallas kernels)
# ---------------------------------------------------------------------------

def bi_global_cha_fuse_reduce(xh_nchw, xl_nchw, params):
    # NCHW -> NHWC and cast to bf16 in one XLA pass.
    xh = jnp.transpose(xh_nchw, (0, 2, 3, 1)).astype(jnp.bfloat16)
    xl = jnp.transpose(xl_nchw, (0, 2, 3, 1)).astype(jnp.bfloat16)
    N, H, W, C_high = xh.shape
    C = xl.shape[-1]

    td2, bu2 = attention_gates(xh.reshape(N, H * W, C_high),
                               xl.reshape(N, H * W, C), params)
    out = fuse_post(xl, xh, td2, bu2, params)
    return jnp.transpose(out, (0, 3, 1, 2))               # back to NCHW, f32


# ---------------------------------------------------------------------------
# Pure-JAX reference (mirrors the kernels' bf16 inputs / f32 accumulate)
# ---------------------------------------------------------------------------

def reference(xh_nchw, xl_nchw, params):
    xh = jnp.transpose(xh_nchw, (0, 2, 3, 1)).astype(jnp.bfloat16)
    xl = jnp.transpose(xl_nchw, (0, 2, 3, 1)).astype(jnp.bfloat16)
    C = xl.shape[-1]

    fh = jnp.einsum('nhwc,cd->nhwd', xh, params["fh_w"],
                    preferred_element_type=jnp.float32)
    fh = jnp.maximum(fh + params["fh_b"][0], 0.0)          # f32

    def gap_gate(x_f32, w1, b1, w2, b2):
        p = jnp.mean(x_f32, axis=(1, 2))                   # [N, C] f32
        h = jnp.dot(p.astype(jnp.bfloat16), w1,
                    preferred_element_type=jnp.float32) + b1[0]
        h = jnp.maximum(h, 0.0).astype(jnp.bfloat16)
        z = jnp.dot(h, w2, preferred_element_type=jnp.float32) + b2[0]
        return 2.0 / (1.0 + jnp.exp(-z))                   # includes the 2x

    td = gap_gate(fh, params["td_w1"], params["td_b1"],
                  params["td_w2"], params["td_b2"])
    bu = gap_gate(xl.astype(jnp.float32), params["bu_w1"], params["bu_b1"],
                  params["bu_w2"], params["bu_b2"])

    xs = (xl.astype(jnp.float32) * td[:, None, None, :]
          + fh * bu[:, None, None, :]).astype(jnp.bfloat16)

    w3 = params["post_w"].reshape(3, 3, C, C)              # HWIO, bf16
    out = lax.conv_general_dilated(xs, w3, (1, 1), 'SAME',
                                   dimension_numbers=('NHWC', 'HWIO', 'NHWC'),
                                   preferred_element_type=jnp.float32)
    out = jnp.maximum(out + params["post_b"][0], 0.0)
    return jnp.transpose(out, (0, 3, 1, 2))


# ---------------------------------------------------------------------------

if __name__ == "__main__":
    N, C_HIGH, C_OUT, H, W, R = 2, 16, 64, 8, 8, 4
    C_BNECK = C_OUT // R

    key = jax.random.PRNGKey(0)
    k_xh, k_xl, k_p = jax.random.split(key, 3)
    xh = jax.random.normal(k_xh, (N, C_HIGH, H, W), jnp.float32)   # NCHW, like PyTorch
    xl = jax.random.normal(k_xl, (N, C_OUT, H, W), jnp.float32)    # in_low == out_channels
    params = init_params(k_p, C_HIGH, C_OUT, C_BNECK)

    out = jax.jit(bi_global_cha_fuse_reduce)(xh, xl, params)
    out = jax.block_until_ready(out)
    assert out.shape == (N, C_OUT, H, W)

    ref = reference(xh, xl, params)
    np.testing.assert_allclose(np.asarray(out), np.asarray(ref),
                               rtol=5e-3, atol=5e-3)
    print("KERNEL_OK")
</pallas_src>

<mosaic_0001>
module attributes {stable_mosaic.version = 11 : i64} {
  func.func @_gates_kernel(%arg0: i32, %arg1: i32, %arg2: memref<1x64x16xbf16, #tpu.memory_space<vmem>>, %arg3: memref<1x64x64xbf16, #tpu.memory_space<vmem>>, %arg4: memref<16x64xbf16, #tpu.memory_space<vmem>>, %arg5: memref<1x64xf32, #tpu.memory_space<vmem>>, %arg6: memref<64x16xbf16, #tpu.memory_space<vmem>>, %arg7: memref<1x16xf32, #tpu.memory_space<vmem>>, %arg8: memref<16x64xbf16, #tpu.memory_space<vmem>>, %arg9: memref<1x64xf32, #tpu.memory_space<vmem>>, %arg10: memref<64x16xbf16, #tpu.memory_space<vmem>>, %arg11: memref<1x16xf32, #tpu.memory_space<vmem>>, %arg12: memref<16x64xbf16, #tpu.memory_space<vmem>>, %arg13: memref<1x64xf32, #tpu.memory_space<vmem>>, %arg14: memref<1x1x64xf32, #tpu.memory_space<vmem>>, %arg15: memref<1x1x64xf32, #tpu.memory_space<vmem>>, %arg16: memref<1x64xf32, #tpu.memory_space<vmem>>, %arg17: memref<1x64xf32, #tpu.memory_space<vmem>>) attributes {dimension_semantics = [#tpu.dimension_semantics<parallel>, #tpu.dimension_semantics<arbitrary>], iteration_bounds = array<i64: 2, 1>, scalar_prefetch = 0 : i64, scratch_operands = 2 : i64, tpu.core_type = #tpu.core_type<tc>, window_params = [{transform_indices = @transform_0, window_bounds = array<i64: 1, 64, 16>}, {transform_indices = @transform_1, window_bounds = array<i64: 1, 64, 64>}, {pipeline_mode = #tpu.pipeline_mode<synchronous>, transform_indices = @transform_2, window_bounds = array<i64: 16, 64>}, {pipeline_mode = #tpu.pipeline_mode<synchronous>, transform_indices = @transform_3, window_bounds = array<i64: 1, 64>}, {pipeline_mode = #tpu.pipeline_mode<synchronous>, transform_indices = @transform_4, window_bounds = array<i64: 64, 16>}, {pipeline_mode = #tpu.pipeline_mode<synchronous>, transform_indices = @transform_5, window_bounds = array<i64: 1, 16>}, {pipeline_mode = #tpu.pipeline_mode<synchronous>, transform_indices = @transform_6, window_bounds = array<i64: 16, 64>}, {pipeline_mode = #tpu.pipeline_mode<synchronous>, transform_indices = @transform_7, window_bounds = array<i64: 1, 64>}, {pipeline_mode = #tpu.pipeline_mode<synchronous>, transform_indices = @transform_8, window_bounds = array<i64: 64, 16>}, {pipeline_mode = #tpu.pipeline_mode<synchronous>, transform_indices = @transform_9, window_bounds = array<i64: 1, 16>}, {pipeline_mode = #tpu.pipeline_mode<synchronous>, transform_indices = @transform_10, window_bounds = array<i64: 16, 64>}, {pipeline_mode = #tpu.pipeline_mode<synchronous>, transform_indices = @transform_11, window_bounds = array<i64: 1, 64>}, {transform_indices = @transform_12, window_bounds = array<i64: 1, 1, 64>}, {transform_indices = @transform_13, window_bounds = array<i64: 1, 1, 64>}]} {
    %c0_i32 = arith.constant 0 : i32
    %0 = arith.cmpi eq, %arg1, %c0_i32 : i32
    %1 = arith.extui %0 : i1 to i32
    %c0_i32_0 = arith.constant 0 : i32
    %2 = arith.cmpi ne, %1, %c0_i32_0 : i32
    scf.if %2 {
      %cst_23 = arith.constant 0.000000e+00 : f32
      %28 = vector.broadcast %cst_23 : f32 to vector<1x64xf32>
      %c0_24 = arith.constant 0 : index
      %c0_25 = arith.constant 0 : index
      %29 = vector.load %arg16[%c0_24, %c0_25] : memref<1x64xf32, #tpu.memory_space<vmem>>, vector<1x64xf32>
      tpu.vector_store %arg16[%c0_24, %c0_25], %28 {strides = array<i32>} : memref<1x64xf32, #tpu.memory_space<vmem>>, vector<1x64xf32>,
      %cst_26 = arith.constant 0.000000e+00 : f32
      %30 = vector.broadcast %cst_26 : f32 to vector<1x64xf32>
      %c0_27 = arith.constant 0 : index
      %c0_28 = arith.constant 0 : index
      %31 = vector.load %arg17[%c0_27, %c0_28] : memref<1x64xf32, #tpu.memory_space<vmem>>, vector<1x64xf32>
      tpu.vector_store %arg17[%c0_27, %c0_28], %30 {strides = array<i32>} : memref<1x64xf32, #tpu.memory_space<vmem>>, vector<1x64xf32>,
    } else {
    }
    %c0 = arith.constant 0 : index
    %c0_1 = arith.constant 0 : index
    %c0_2 = arith.constant 0 : index
    %3 = vector.load %arg2[%c0, %c0_1, %c0_2] : memref<1x64x16xbf16, #tpu.memory_space<vmem>>, vector<1x64x16xbf16>
    %4 = vector.shape_cast %3 : vector<1x64x16xbf16> to vector<64x16xbf16>
    %c0_3 = arith.constant 0 : index
    %c0_4 = arith.constant 0 : index
    %5 = vector.load %arg4[%c0_3, %c0_4] : memref<16x64xbf16, #tpu.memory_space<vmem>>, vector<16x64xbf16>
    %cst = arith.constant dense<0.000000e+00> : vector<64x64xf32>
    %6 = tpu.matmul %4, %5, %cst {dimension_numbers = #tpu.dot_dimension_numbers<[1], [0], [0], [1], [0, 0, 1, 1], [], []>} : vector<64x16xbf16>, vector<16x64xbf16>, vector<64x64xf32> -> vector<64x64xf32>
    %c0_5 = arith.constant 0 : index
    %c0_6 = arith.constant 0 : index
    %7 = vector.load %arg5[%c0_5, %c0_6] : memref<1x64xf32, #tpu.memory_space<vmem>>, vector<1x64xf32>
    %8 = vector.broadcast %7 : vector<1x64xf32> to vector<64x64xf32>
    %9 = arith.addf %6, %8 : vector<64x64xf32>
    %cst_7 = arith.constant 0.000000e+00 : f32
    %10 = vector.broadcast %cst_7 : f32 to vector<64x64xf32>
    %11 = arith.maximumf %9, %10 : vector<64x64xf32>
    %c0_8 = arith.constant 0 : index
    %c0_9 = arith.constant 0 : index
    %12 = vector.load %arg16[%c0_8, %c0_9] : memref<1x64xf32, #tpu.memory_space<vmem>>, vector<1x64xf32>
    %cst_10 = arith.constant dense<0.000000e+00> : vector<64xf32>
    %13 = vector.multi_reduction <add>, %11, %cst_10 [0] : vector<64x64xf32> to vector<64xf32>
    %14 = vector.shape_cast %13 : vector<64xf32> to vector<1x64xf32>
    %15 = arith.addf %12, %14 : vector<1x64xf32>
    %c0_11 = arith.constant 0 : index
    %c0_12 = arith.constant 0 : index
    %16 = vector.load %arg16[%c0_11, %c0_12] : memref<1x64xf32, #tpu.memory_space<vmem>>, vector<1x64xf32>
    tpu.vector_store %arg16[%c0_11, %c0_12], %15 {strides = array<i32>} : memref<1x64xf32, #tpu.memory_space<vmem>>, vector<1x64xf32>,
    %c0_13 = arith.constant 0 : index
    %c0_14 = arith.constant 0 : index
    %17 = vector.load %arg17[%c0_13, %c0_14] : memref<1x64xf32, #tpu.memory_space<vmem>>, vector<1x64xf32>
    %c0_15 = arith.constant 0 : index
    %c0_16 = arith.constant 0 : index
    %c0_17 = arith.constant 0 : index
    %18 = vector.load %arg3[%c0_15, %c0_16, %c0_17] : memref<1x64x64xbf16, #tpu.memory_space<vmem>>, vector<1x64x64xbf16>
    %19 = vector.shape_cast %18 : vector<1x64x64xbf16> to vector<64x64xbf16>
    %20 = arith.extf %19 : vector<64x64xbf16> to vector<64x64xf32>
    %cst_18 = arith.constant dense<0.000000e+00> : vector<64xf32>
    %21 = vector.multi_reduction <add>, %20, %cst_18 [0] : vector<64x64xf32> to vector<64xf32>
    %22 = vector.shape_cast %21 : vector<64xf32> to vector<1x64xf32>
    %23 = arith.addf %17, %22 : vector<1x64xf32>
    %c0_19 = arith.constant 0 : index
    %c0_20 = arith.constant 0 : index
    %24 = vector.load %arg17[%c0_19, %c0_20] : memref<1x64xf32, #tpu.memory_space<vmem>>, vector<1x64xf32>
    tpu.vector_store %arg17[%c0_19, %c0_20], %23 {strides = array<i32>} : memref<1x64xf32, #tpu.memory_space<vmem>>, vector<1x64xf32>,
    %c0_i32_21 = arith.constant 0 : i32
    %25 = arith.cmpi eq, %arg1, %c0_i32_21 : i32
    %26 = arith.extui %25 : i1 to i32
    %c0_i32_22 = arith.constant 0 : i32
    %27 = arith.cmpi ne, %26, %c0_i32_22 : i32
    scf.if %27 {
      %c0_23 = arith.constant 0 : index
      %c0_24 = arith.constant 0 : index
      %28 = vector.load %arg16[%c0_23, %c0_24] : memref<1x64xf32, #tpu.memory_space<vmem>>, vector<1x64xf32>
      %cst_25 = arith.constant 1.562500e-02 : f32
      %29 = vector.broadcast %cst_25 : f32 to vector<1x64xf32>
      %30 = arith.mulf %28, %29 : vector<1x64xf32>
      %c0_26 = arith.constant 0 : index
      %c0_27 = arith.constant 0 : index
      %31 = vector.load %arg6[%c0_26, %c0_27] : memref<64x16xbf16, #tpu.memory_space<vmem>>, vector<64x16xbf16>
      %c0_28 = arith.constant 0 : index
      %c0_29 = arith.constant 0 : index
      %32 = vector.load %arg7[%c0_28, %c0_29] : memref<1x16xf32, #tpu.memory_space<vmem>>, vector<1x16xf32>
      %c0_30 = arith.constant 0 : index
      %c0_31 = arith.constant 0 : index
      %33 = vector.load %arg8[%c0_30, %c0_31] : memref<16x64xbf16, #tpu.memory_space<vmem>>, vector<16x64xbf16>
      %c0_32 = arith.constant 0 : index
      %c0_33 = arith.constant 0 : index
      %34 = vector.load %arg9[%c0_32, %c0_33] : memref<1x64xf32, #tpu.memory_space<vmem>>, vector<1x64xf32>
      %35 = arith.truncf %30 : vector<1x64xf32> to vector<1x64xbf16>
      %cst_34 = arith.constant dense<0.000000e+00> : vector<1x16xf32>
      %36 = tpu.matmul %35, %31, %cst_34 {dimension_numbers = #tpu.dot_dimension_numbers<[1], [0], [0], [1], [0, 0, 1, 1], [], []>} : vector<1x64xbf16>, vector<64x16xbf16>, vector<1x16xf32> -> vector<1x16xf32>
      %37 = arith.addf %36, %32 : vector<1x16xf32>
      %cst_35 = arith.constant 0.000000e+00 : f32
      %38 = vector.broadcast %cst_35 : f32 to vector<1x16xf32>
      %39 = arith.maximumf %37, %38 : vector<1x16xf32>
      %40 = arith.truncf %39 : vector<1x16xf32> to vector<1x16xbf16>
      %cst_36 = arith.constant dense<0.000000e+00> : vector<1x64xf32>
      %41 = tpu.matmul %40, %33, %cst_36 {dimension_numbers = #tpu.dot_dimension_numbers<[1], [0], [0], [1], [0, 0, 1, 1], [], []>} : vector<1x16xbf16>, vector<16x64xbf16>, vector<1x64xf32> -> vector<1x64xf32>
      %42 = arith.addf %41, %34 : vector<1x64xf32>
      %cst_37 = arith.constant 0.000000e+00 : f32
      %43 = vector.broadcast %cst_37 : f32 to vector<1x64xf32>
      %44 = arith.subf %43, %42 : vector<1x64xf32>
      %45 = math.exp %44 : vector<1x64xf32>
      %cst_38 = arith.constant 1.000000e+00 : f32
      %46 = vector.broadcast %cst_38 : f32 to vector<1x64xf32>
      %47 = arith.addf %46, %45 : vector<1x64xf32>
      %cst_39 = arith.constant 2.000000e+00 : f32
      %48 = vector.broadcast %cst_39 : f32 to vector<1x64xf32>
      %49 = arith.divf %48, %47 : vector<1x64xf32>
      %c0_40 = arith.constant 0 : index
      %c0_41 = arith.constant 0 : index
      %c0_42 = arith.constant 0 : index
      %50 = vector.load %arg14[%c0_40, %c0_41, %c0_42] : memref<1x1x64xf32, #tpu.memory_space<vmem>>, vector<1x1x64xf32>
      %51 = vector.shape_cast %50 : vector<1x1x64xf32> to vector<1x64xf32>
      %52 = vector.shape_cast %49 : vector<1x64xf32> to vector<1x1x64xf32>
      tpu.vector_store %arg14[%c0_40, %c0_41, %c0_42], %52 {strides = array<i32>} : memref<1x1x64xf32, #tpu.memory_space<vmem>>, vector<1x1x64xf32>,
      %c0_43 = arith.constant 0 : index
      %c0_44 = arith.constant 0 : index
      %53 = vector.load %arg17[%c0_43, %c0_44] : memref<1x64xf32, #tpu.memory_space<vmem>>, vector<1x64xf32>
      %cst_45 = arith.constant 1.562500e-02 : f32
      %54 = vector.broadcast %cst_45 : f32 to vector<1x64xf32>
      %55 = arith.mulf %53, %54 : vector<1x64xf32>
      %c0_46 = arith.constant 0 : index
      %c0_47 = arith.constant 0 : index
      %56 = vector.load %arg10[%c0_46, %c0_47] : memref<64x16xbf16, #tpu.memory_space<vmem>>, vector<64x16xbf16>
      %c0_48 = arith.constant 0 : index
      %c0_49 = arith.constant 0 : index
      %57 = vector.load %arg11[%c0_48, %c0_49] : memref<1x16xf32, #tpu.memory_space<vmem>>, vector<1x16xf32>
      %c0_50 = arith.constant 0 : index
      %c0_51 = arith.constant 0 : index
      %58 = vector.load %arg12[%c0_50, %c0_51] : memref<16x64xbf16, #tpu.memory_space<vmem>>, vector<16x64xbf16>
      %c0_52 = arith.constant 0 : index
      %c0_53 = arith.constant 0 : index
      %59 = vector.load %arg13[%c0_52, %c0_53] : memref<1x64xf32, #tpu.memory_space<vmem>>, vector<1x64xf32>
      %60 = arith.truncf %55 : vector<1x64xf32> to vector<1x64xbf16>
      %cst_54 = arith.constant dense<0.000000e+00> : vector<1x16xf32>
      %61 = tpu.matmul %60, %56, %cst_54 {dimension_numbers = #tpu.dot_dimension_numbers<[1], [0], [0], [1], [0, 0, 1, 1], [], []>} : vector<1x64xbf16>, vector<64x16xbf16>, vector<1x16xf32> -> vector<1x16xf32>
      %62 = arith.addf %61, %57 : vector<1x16xf32>
      %cst_55 = arith.constant 0.000000e+00 : f32
      %63 = vector.broadcast %cst_55 : f32 to vector<1x16xf32>
      %64 = arith.maximumf %62, %63 : vector<1x16xf32>
      %65 = arith.truncf %64 : vector<1x16xf32> to vector<1x16xbf16>
      %cst_56 = arith.constant dense<0.000000e+00> : vector<1x64xf32>
      %66 = tpu.matmul %65, %58, %cst_56 {dimension_numbers = #tpu.dot_dimension_numbers<[1], [0], [0], [1], [0, 0, 1, 1], [], []>} : vector<1x16xbf16>, vector<16x64xbf16>, vector<1x64xf32> -> vector<1x64xf32>
      %67 = arith.addf %66, %59 : vector<1x64xf32>
      %cst_57 = arith.constant 0.000000e+00 : f32
      %68 = vector.broadcast %cst_57 : f32 to vector<1x64xf32>
      %69 = arith.subf %68, %67 : vector<1x64xf32>
      %70 = math.exp %69 : vector<1x64xf32>
      %cst_58 = arith.constant 1.000000e+00 : f32
      %71 = vector.broadcast %cst_58 : f32 to vector<1x64xf32>
      %72 = arith.addf %71, %70 : vector<1x64xf32>
      %cst_59 = arith.constant 2.000000e+00 : f32
      %73 = vector.broadcast %cst_59 : f32 to vector<1x64xf32>
      %74 = arith.divf %73, %72 : vector<1x64xf32>
      %c0_60 = arith.constant 0 : index
      %c0_61 = arith.constant 0 : index
      %c0_62 = arith.constant 0 : index
      %75 = vector.load %arg15[%c0_60, %c0_61, %c0_62] : memref<1x1x64xf32, #tpu.memory_space<vmem>>, vector<1x1x64xf32>
      %76 = vector.shape_cast %75 : vector<1x1x64xf32> to vector<1x64xf32>
      %77 = vector.shape_cast %74 : vector<1x64xf32> to vector<1x1x64xf32>
      tpu.vector_store %arg15[%c0_60, %c0_61, %c0_62], %77 {strides = array<i32>} : memref<1x1x64xf32, #tpu.memory_space<vmem>>, vector<1x1x64xf32>,
    } else {
    }
    return
  }
  func.func @transform_0(%arg0: i32, %arg1: i32) -> (i32, i32, i32) {
    %c0_i32 = arith.constant 0 : i32
    %c0_i32_0 = arith.constant 0 : i32
    return %arg0, %arg1, %c0_i32 : i32, i32, i32
  }
  func.func @transform_1(%arg0: i32, %arg1: i32) -> (i32, i32, i32) {
    %c0_i32 = arith.constant 0 : i32
    %c0_i32_0 = arith.constant 0 : i32
    return %arg0, %arg1, %c0_i32 : i32, i32, i32
  }
  func.func @transform_2(%arg0: i32, %arg1: i32) -> (i32, i32) {
    %c0_i32 = arith.constant 0 : i32
    %c0_i32_0 = arith.constant 0 : i32
    %c0_i32_1 = arith.constant 0 : i32
    return %c0_i32, %c0_i32_0 : i32, i32
  }
  func.func @transform_3(%arg0: i32, %arg1: i32) -> (i32, i32) {
    %c0_i32 = arith.constant 0 : i32
    %c0_i32_0 = arith.constant 0 : i32
    %c0_i32_1 = arith.constant 0 : i32
    return %c0_i32, %c0_i32_0 : i32, i32
  }
  func.func @transform_4(%arg0: i32, %arg1: i32) -> (i32, i32) {
    %c0_i32 = arith.constant 0 : i32
    %c0_i32_0 = arith.constant 0 : i32
    %c0_i32_1 = arith.constant 0 : i32
    return %c0_i32, %c0_i32_0 : i32, i32
  }
  func.func @transform_5(%arg0: i32, %arg1: i32) -> (i32, i32) {
    %c0_i32 = arith.constant 0 : i32
    %c0_i32_0 = arith.constant 0 : i32
    %c0_i32_1 = arith.constant 0 : i32
    return %c0_i32, %c0_i32_0 : i32, i32
  }
  func.func @transform_6(%arg0: i32, %arg1: i32) -> (i32, i32) {
    %c0_i32 = arith.constant 0 : i32
    %c0_i32_0 = arith.constant 0 : i32
    %c0_i32_1 = arith.constant 0 : i32
    return %c0_i32, %c0_i32_0 : i32, i32
  }
  func.func @transform_7(%arg0: i32, %arg1: i32) -> (i32, i32) {
    %c0_i32 = arith.constant 0 : i32
    %c0_i32_0 = arith.constant 0 : i32
    %c0_i32_1 = arith.constant 0 : i32
    return %c0_i32, %c0_i32_0 : i32, i32
  }
  func.func @transform_8(%arg0: i32, %arg1: i32) -> (i32, i32) {
    %c0_i32 = arith.constant 0 : i32
    %c0_i32_0 = arith.constant 0 : i32
    %c0_i32_1 = arith.constant 0 : i32
    return %c0_i32, %c0_i32_0 : i32, i32
  }
  func.func @transform_9(%arg0: i32, %arg1: i32) -> (i32, i32) {
    %c0_i32 = arith.constant 0 : i32
    %c0_i32_0 = arith.constant 0 : i32
    %c0_i32_1 = arith.constant 0 : i32
    return %c0_i32, %c0_i32_0 : i32, i32
  }
  func.func @transform_10(%arg0: i32, %arg1: i32) -> (i32, i32) {
    %c0_i32 = arith.constant 0 : i32
    %c0_i32_0 = arith.constant 0 : i32
    %c0_i32_1 = arith.constant 0 : i32
    return %c0_i32, %c0_i32_0 : i32, i32
  }
  func.func @transform_11(%arg0: i32, %arg1: i32) -> (i32, i32) {
    %c0_i32 = arith.constant 0 : i32
    %c0_i32_0 = arith.constant 0 : i32
    %c0_i32_1 = arith.constant 0 : i32
    return %c0_i32, %c0_i32_0 : i32, i32
  }
  func.func @transform_12(%arg0: i32, %arg1: i32) -> (i32, i32, i32) {
    %c0_i32 = arith.constant 0 : i32
    %c0_i32_0 = arith.constant 0 : i32
    %c0_i32_1 = arith.constant 0 : i32
    return %arg0, %c0_i32, %c0_i32_0 : i32, i32, i32
  }
  func.func @transform_13(%arg0: i32, %arg1: i32) -> (i32, i32, i32) {
    %c0_i32 = arith.constant 0 : i32
    %c0_i32_0 = arith.constant 0 : i32
    %c0_i32_1 = arith.constant 0 : i32
    return %arg0, %c0_i32, %c0_i32_0 : i32, i32, i32
  }
}

module attributes {stable_mosaic.version = 11 : i64} {
  func.func @_fuse_post_kernel(%arg0: i32, %arg1: memref<1x8x8x64xbf16, #tpu.memory_space<vmem>>, %arg2: memref<1x8x8x16xbf16, #tpu.memory_space<vmem>>, %arg3: memref<1x1x64xf32, #tpu.memory_space<vmem>>, %arg4: memref<1x1x64xf32, #tpu.memory_space<vmem>>, %arg5: memref<16x64xbf16, #tpu.memory_space<vmem>>, %arg6: memref<1x64xf32, #tpu.memory_space<vmem>>, %arg7: memref<9x64x64xbf16, #tpu.memory_space<vmem>>, %arg8: memref<1x64xf32, #tpu.memory_space<vmem>>, %arg9: memref<1x8x8x64xf32, #tpu.memory_space<vmem>>) attributes {dimension_semantics = [#tpu.dimension_semantics<parallel>], iteration_bounds = array<i64: 2>, scalar_prefetch = 0 : i64, scratch_operands = 0 : i64, tpu.core_type = #tpu.core_type<tc>, window_params = [{transform_indices = @transform_0, window_bounds = array<i64: 1, 8, 8, 64>}, {transform_indices = @transform_1, window_bounds = array<i64: 1, 8, 8, 16>}, {transform_indices = @transform_2, window_bounds = array<i64: 1, 1, 64>}, {transform_indices = @transform_3, window_bounds = array<i64: 1, 1, 64>}, {pipeline_mode = #tpu.pipeline_mode<synchronous>, transform_indices = @transform_4, window_bounds = array<i64: 16, 64>}, {pipeline_mode = #tpu.pipeline_mode<synchronous>, transform_indices = @transform_5, window_bounds = array<i64: 1, 64>}, {pipeline_mode = #tpu.pipeline_mode<synchronous>, transform_indices = @transform_6, window_bounds = array<i64: 9, 64, 64>}, {pipeline_mode = #tpu.pipeline_mode<synchronous>, transform_indices = @transform_7, window_bounds = array<i64: 1, 64>}, {transform_indices = @transform_8, window_bounds = array<i64: 1, 8, 8, 64>}]} {
    %c0 = arith.constant 0 : index
    %c0_0 = arith.constant 0 : index
    %c0_1 = arith.constant 0 : index
    %c0_2 = arith.constant 0 : index
    %0 = vector.load %arg2[%c0, %c0_0, %c0_1, %c0_2] : memref<1x8x8x16xbf16, #tpu.memory_space<vmem>>, vector<1x8x8x16xbf16>
    %1 = vector.shape_cast %0 : vector<1x8x8x16xbf16> to vector<8x8x16xbf16>
    %2 = vector.shape_cast %1 : vector<8x8x16xbf16> to vector<64x16xbf16>
    %c0_3 = arith.constant 0 : index
    %c0_4 = arith.constant 0 : index
    %3 = vector.load %arg5[%c0_3, %c0_4] : memref<16x64xbf16, #tpu.memory_space<vmem>>, vector<16x64xbf16>
    %cst = arith.constant dense<0.000000e+00> : vector<64x64xf32>
    %4 = tpu.matmul %2, %3, %cst {dimension_numbers = #tpu.dot_dimension_numbers<[1], [0], [0], [1], [0, 0, 1, 1], [], []>} : vector<64x16xbf16>, vector<16x64xbf16>, vector<64x64xf32> -> vector<64x64xf32>
    %c0_5 = arith.constant 0 : index
    %c0_6 = arith.constant 0 : index
    %5 = vector.load %arg6[%c0_5, %c0_6] : memref<1x64xf32, #tpu.memory_space<vmem>>, vector<1x64xf32>
    %6 = vector.broadcast %5 : vector<1x64xf32> to vector<64x64xf32>
    %7 = arith.addf %4, %6 : vector<64x64xf32>
    %cst_7 = arith.constant 0.000000e+00 : f32
    %8 = vector.broadcast %cst_7 : f32 to vector<64x64xf32>
    %9 = arith.maximumf %7, %8 : vector<64x64xf32>
    %c0_8 = arith.constant 0 : index
    %c0_9 = arith.constant 0 : index
    %c0_10 = arith.constant 0 : index
    %10 = vector.load %arg3[%c0_8, %c0_9, %c0_10] : memref<1x1x64xf32, #tpu.memory_space<vmem>>, vector<1x1x64xf32>
    %11 = vector.shape_cast %10 : vector<1x1x64xf32> to vector<1x64xf32>
    %c0_11 = arith.constant 0 : index
    %c0_12 = arith.constant 0 : index
    %c0_13 = arith.constant 0 : index
    %12 = vector.load %arg4[%c0_11, %c0_12, %c0_13] : memref<1x1x64xf32, #tpu.memory_space<vmem>>, vector<1x1x64xf32>
    %13 = vector.shape_cast %12 : vector<1x1x64xf32> to vector<1x64xf32>
    %c0_14 = arith.constant 0 : index
    %c0_15 = arith.constant 0 : index
    %c0_16 = arith.constant 0 : index
    %c0_17 = arith.constant 0 : index
    %14 = vector.load %arg1[%c0_14, %c0_15, %c0_16, %c0_17] : memref<1x8x8x64xbf16, #tpu.memory_space<vmem>>, vector<1x8x8x64xbf16>
    %15 = vector.shape_cast %14 : vector<1x8x8x64xbf16> to vector<8x8x64xbf16>
    %16 = vector.shape_cast %15 : vector<8x8x64xbf16> to vector<64x64xbf16>
    %17 = arith.extf %16 : vector<64x64xbf16> to vector<64x64xf32>
    %18 = vector.broadcast %11 : vector<1x64xf32> to vector<64x64xf32>
    %19 = arith.mulf %17, %18 : vector<64x64xf32>
    %20 = vector.broadcast %13 : vector<1x64xf32> to vector<64x64xf32>
    %21 = arith.mulf %9, %20 : vector<64x64xf32>
    %22 = arith.addf %19, %21 : vector<64x64xf32>
    %23 = arith.truncf %22 : vector<64x64xf32> to vector<64x64xbf16>
    %24 = vector.shape_cast %23 : vector<64x64xbf16> to vector<8x8x64xbf16>
    %cst_18 = arith.constant 0.000000e+00 : bf16
    %25 = vector.broadcast %cst_18 : bf16 to vector<1x8x64xbf16>
    %26 = tpu.concatenate %25, %24, %25 in 0 : vector<1x8x64xbf16>, vector<8x8x64xbf16>, vector<1x8x64xbf16> -> vector<10x8x64xbf16>
    %cst_19 = arith.constant 0.000000e+00 : bf16
    %27 = vector.broadcast %cst_19 : bf16 to vector<10x1x64xbf16>
    %28 = tpu.concatenate %27, %26, %27 in 1 : vector<10x1x64xbf16>, vector<10x8x64xbf16>, vector<10x1x64xbf16> -> vector<10x10x64xbf16>
    %29 = vector.extract_strided_slice %28 {offsets = [0, 0, 0], sizes = [8, 8, 64], strides = [1, 1, 1]} : vector<10x10x64xbf16> to vector<8x8x64xbf16>
    %30 = vector.shape_cast %29 : vector<8x8x64xbf16> to vector<64x64xbf16>
    %c0_20 = arith.constant 0 : index
    %c0_21 = arith.constant 0 : index
    %c0_22 = arith.constant 0 : index
    %31 = vector.load %arg7[%c0_20, %c0_21, %c0_22] : memref<9x64x64xbf16, #tpu.memory_space<vmem>>, vector<1x64x64xbf16>
    %32 = vector.shape_cast %31 : vector<1x64x64xbf16> to vector<64x64xbf16>
    %cst_23 = arith.constant dense<0.000000e+00> : vector<64x64xf32>
    %33 = tpu.matmul %30, %32, %cst_23 {dimension_numbers = #tpu.dot_dimension_numbers<[1], [0], [0], [1], [0, 0, 1, 1], [], []>} : vector<64x64xbf16>, vector<64x64xbf16>, vector<64x64xf32> -> vector<64x64xf32>
    %34 = vector.extract_strided_slice %28 {offsets = [0, 1, 0], sizes = [8, 8, 64], strides = [1, 1, 1]} : vector<10x10x64xbf16> to vector<8x8x64xbf16>
    %35 = vector.shape_cast %34 : vector<8x8x64xbf16> to vector<64x64xbf16>
    %c1 = arith.constant 1 : index
    %c0_24 = arith.constant 0 : index
    %c0_25 = arith.constant 0 : index
    %36 = vector.load %arg7[%c1, %c0_24, %c0_25] : memref<9x64x64xbf16, #tpu.memory_space<vmem>>, vector<1x64x64xbf16>
    %37 = vector.shape_cast %36 : vector<1x64x64xbf16> to vector<64x64xbf16>
    %cst_26 = arith.constant dense<0.000000e+00> : vector<64x64xf32>
    %38 = tpu.matmul %35, %37, %cst_26 {dimension_numbers = #tpu.dot_dimension_numbers<[1], [0], [0], [1], [0, 0, 1, 1], [], []>} : vector<64x64xbf16>, vector<64x64xbf16>, vector<64x64xf32> -> vector<64x64xf32>
    %39 = arith.addf %33, %38 : vector<64x64xf32>
    %40 = vector.extract_strided_slice %28 {offsets = [0, 2, 0], sizes = [8, 8, 64], strides = [1, 1, 1]} : vector<10x10x64xbf16> to vector<8x8x64xbf16>
    %41 = vector.shape_cast %40 : vector<8x8x64xbf16> to vector<64x64xbf16>
    %c2 = arith.constant 2 : index
    %c0_27 = arith.constant 0 : index
    %c0_28 = arith.constant 0 : index
    %42 = vector.load %arg7[%c2, %c0_27, %c0_28] : memref<9x64x64xbf16, #tpu.memory_space<vmem>>, vector<1x64x64xbf16>
    %43 = vector.shape_cast %42 : vector<1x64x64xbf16> to vector<64x64xbf16>
    %cst_29 = arith.constant dense<0.000000e+00> : vector<64x64xf32>
    %44 = tpu.matmul %41, %43, %cst_29 {dimension_numbers = #tpu.dot_dimension_numbers<[1], [0], [0], [1], [0, 0, 1, 1], [], []>} : vector<64x64xbf16>, vector<64x64xbf16>, vector<64x64xf32> -> vector<64x64xf32>
    %45 = arith.addf %39, %44 : vector<64x64xf32>
    %46 = vector.extract_strided_slice %28 {offsets = [1, 0, 0], sizes = [8, 8, 64], strides = [1, 1, 1]} : vector<10x10x64xbf16> to vector<8x8x64xbf16>
    %47 = vector.shape_cast %46 : vector<8x8x64xbf16> to vector<64x64xbf16>
    %c3 = arith.constant 3 : index
    %c0_30 = arith.constant 0 : index
    %c0_31 = arith.constant 0 : index
    %48 = vector.load %arg7[%c3, %c0_30, %c0_31] : memref<9x64x64xbf16, #tpu.memory_space<vmem>>, vector<1x64x64xbf16>
    %49 = vector.shape_cast %48 : vector<1x64x64xbf16> to vector<64x64xbf16>
    %cst_32 = arith.constant dense<0.000000e+00> : vector<64x64xf32>
    %50 = tpu.matmul %47, %49, %cst_32 {dimension_numbers = #tpu.dot_dimension_numbers<[1], [0], [0], [1], [0, 0, 1, 1], [], []>} : vector<64x64xbf16>, vector<64x64xbf16>, vector<64x64xf32> -> vector<64x64xf32>
    %51 = arith.addf %45, %50 : vector<64x64xf32>
    %52 = vector.extract_strided_slice %28 {offsets = [1, 1, 0], sizes = [8, 8, 64], strides = [1, 1, 1]} : vector<10x10x64xbf16> to vector<8x8x64xbf16>
    %53 = vector.shape_cast %52 : vector<8x8x64xbf16> to vector<64x64xbf16>
    %c4 = arith.constant 4 : index
    %c0_33 = arith.constant 0 : index
    %c0_34 = arith.constant 0 : index
    %54 = vector.load %arg7[%c4, %c0_33, %c0_34] : memref<9x64x64xbf16, #tpu.memory_space<vmem>>, vector<1x64x64xbf16>
    %55 = vector.shape_cast %54 : vector<1x64x64xbf16> to vector<64x64xbf16>
    %cst_35 = arith.constant dense<0.000000e+00> : vector<64x64xf32>
    %56 = tpu.matmul %53, %55, %cst_35 {dimension_numbers = #tpu.dot_dimension_numbers<[1], [0], [0], [1], [0, 0, 1, 1], [], []>} : vector<64x64xbf16>, vector<64x64xbf16>, vector<64x64xf32> -> vector<64x64xf32>
    %57 = arith.addf %51, %56 : vector<64x64xf32>
    %58 = vector.extract_strided_slice %28 {offsets = [1, 2, 0], sizes = [8, 8, 64], strides = [1, 1, 1]} : vector<10x10x64xbf16> to vector<8x8x64xbf16>
    %59 = vector.shape_cast %58 : vector<8x8x64xbf16> to vector<64x64xbf16>
    %c5 = arith.constant 5 : index
    %c0_36 = arith.constant 0 : index
    %c0_37 = arith.constant 0 : index
    %60 = vector.load %arg7[%c5, %c0_36, %c0_37] : memref<9x64x64xbf16, #tpu.memory_space<vmem>>, vector<1x64x64xbf16>
    %61 = vector.shape_cast %60 : vector<1x64x64xbf16> to vector<64x64xbf16>
    %cst_38 = arith.constant dense<0.000000e+00> : vector<64x64xf32>
    %62 = tpu.matmul %59, %61, %cst_38 {dimension_numbers = #tpu.dot_dimension_numbers<[1], [0], [0], [1], [0, 0, 1, 1], [], []>} : vector<64x64xbf16>, vector<64x64xbf16>, vector<64x64xf32> -> vector<64x64xf32>
    %63 = arith.addf %57, %62 : vector<64x64xf32>
    %64 = vector.extract_strided_slice %28 {offsets = [2, 0, 0], sizes = [8, 8, 64], strides = [1, 1, 1]} : vector<10x10x64xbf16> to vector<8x8x64xbf16>
    %65 = vector.shape_cast %64 : vector<8x8x64xbf16> to vector<64x64xbf16>
    %c6 = arith.constant 6 : index
    %c0_39 = arith.constant 0 : index
    %c0_40 = arith.constant 0 : index
    %66 = vector.load %arg7[%c6, %c0_39, %c0_40] : memref<9x64x64xbf16, #tpu.memory_space<vmem>>, vector<1x64x64xbf16>
    %67 = vector.shape_cast %66 : vector<1x64x64xbf16> to vector<64x64xbf16>
    %cst_41 = arith.constant dense<0.000000e+00> : vector<64x64xf32>
    %68 = tpu.matmul %65, %67, %cst_41 {dimension_numbers = #tpu.dot_dimension_numbers<[1], [0], [0], [1], [0, 0, 1, 1], [], []>} : vector<64x64xbf16>, vector<64x64xbf16>, vector<64x64xf32> -> vector<64x64xf32>
    %69 = arith.addf %63, %68 : vector<64x64xf32>
    %70 = vector.extract_strided_slice %28 {offsets = [2, 1, 0], sizes = [8, 8, 64], strides = [1, 1, 1]} : vector<10x10x64xbf16> to vector<8x8x64xbf16>
    %71 = vector.shape_cast %70 : vector<8x8x64xbf16> to vector<64x64xbf16>
    %c7 = arith.constant 7 : index
    %c0_42 = arith.constant 0 : index
    %c0_43 = arith.constant 0 : index
    %72 = vector.load %arg7[%c7, %c0_42, %c0_43] : memref<9x64x64xbf16, #tpu.memory_space<vmem>>, vector<1x64x64xbf16>
    %73 = vector.shape_cast %72 : vector<1x64x64xbf16> to vector<64x64xbf16>
    %cst_44 = arith.constant dense<0.000000e+00> : vector<64x64xf32>
    %74 = tpu.matmul %71, %73, %cst_44 {dimension_numbers = #tpu.dot_dimension_numbers<[1], [0], [0], [1], [0, 0, 1, 1], [], []>} : vector<64x64xbf16>, vector<64x64xbf16>, vector<64x64xf32> -> vector<64x64xf32>
    %75 = arith.addf %69, %74 : vector<64x64xf32>
    %76 = vector.extract_strided_slice %28 {offsets = [2, 2, 0], sizes = [8, 8, 64], strides = [1, 1, 1]} : vector<10x10x64xbf16> to vector<8x8x64xbf16>
    %77 = vector.shape_cast %76 : vector<8x8x64xbf16> to vector<64x64xbf16>
    %c8 = arith.constant 8 : index
    %c0_45 = arith.constant 0 : index
    %c0_46 = arith.constant 0 : index
    %78 = vector.load %arg7[%c8, %c0_45, %c0_46] : memref<9x64x64xbf16, #tpu.memory_space<vmem>>, vector<1x64x64xbf16>
    %79 = vector.shape_cast %78 : vector<1x64x64xbf16> to vector<64x64xbf16>
    %cst_47 = arith.constant dense<0.000000e+00> : vector<64x64xf32>
    %80 = tpu.matmul %77, %79, %cst_47 {dimension_numbers = #tpu.dot_dimension_numbers<[1], [0], [0], [1], [0, 0, 1, 1], [], []>} : vector<64x64xbf16>, vector<64x64xbf16>, vector<64x64xf32> -> vector<64x64xf32>
    %81 = arith.addf %75, %80 : vector<64x64xf32>
    %c0_48 = arith.constant 0 : index
    %c0_49 = arith.constant 0 : index
    %82 = vector.load %arg8[%c0_48, %c0_49] : memref<1x64xf32, #tpu.memory_space<vmem>>, vector<1x64xf32>
    %83 = vector.broadcast %82 : vector<1x64xf32> to vector<64x64xf32>
    %84 = arith.addf %81, %83 : vector<64x64xf32>
    %cst_50 = arith.constant 0.000000e+00 : f32
    %85 = vector.broadcast %cst_50 : f32 to vector<64x64xf32>
    %86 = arith.maximumf %84, %85 : vector<64x64xf32>
    %87 = vector.shape_cast %86 : vector<64x64xf32> to vector<8x8x64xf32>
    %c0_51 = arith.constant 0 : index
    %c0_52 = arith.constant 0 : index
    %c0_53 = arith.constant 0 : index
    %c0_54 = arith.constant 0 : index
    %88 = vector.load %arg9[%c0_51, %c0_52, %c0_53, %c0_54] : memref<1x8x8x64xf32, #tpu.memory_space<vmem>>, vector<1x8x8x64xf32>
    %89 = vector.shape_cast %88 : vector<1x8x8x64xf32> to vector<8x8x64xf32>
    %90 = vector.shape_cast %87 : vector<8x8x64xf32> to vector<1x8x8x64xf32>
    tpu.vector_store %arg9[%c0_51, %c0_52, %c0_53, %c0_54], %90 {strides = array<i32>} : memref<1x8x8x64xf32, #tpu.memory_space<vmem>>, vector<1x8x8x64xf32>,
    return
  }
  func.func @transform_0(%arg0: i32) -> (i32, i32, i32, i32) {
    %c0_i32 = arith.constant 0 : i32
    %c0_i32_0 = arith.constant 0 : i32
    %c0_i32_1 = arith.constant 0 : i32
    %c0_i32_2 = arith.constant 0 : i32
    return %arg0, %c0_i32, %c0_i32_0, %c0_i32_1 : i32, i32, i32, i32
  }
  func.func @transform_1(%arg0: i32) -> (i32, i32, i32, i32) {
    %c0_i32 = arith.constant 0 : i32
    %c0_i32_0 = arith.constant 0 : i32
    %c0_i32_1 = arith.constant 0 : i32
    %c0_i32_2 = arith.constant 0 : i32
    return %arg0, %c0_i32, %c0_i32_0, %c0_i32_1 : i32, i32, i32, i32
  }
  func.func @transform_2(%arg0: i32) -> (i32, i32, i32) {
    %c0_i32 = arith.constant 0 : i32
    %c0_i32_0 = arith.constant 0 : i32
    %c0_i32_1 = arith.constant 0 : i32
    return %arg0, %c0_i32, %c0_i32_0 : i32, i32, i32
  }
  func.func @transform_3(%arg0: i32) -> (i32, i32, i32) {
    %c0_i32 = arith.constant 0 : i32
    %c0_i32_0 = arith.constant 0 : i32
    %c0_i32_1 = arith.constant 0 : i32
    return %arg0, %c0_i32, %c0_i32_0 : i32, i32, i32
  }
  func.func @transform_4(%arg0: i32) -> (i32, i32) {
    %c0_i32 = arith.constant 0 : i32
    %c0_i32_0 = arith.constant 0 : i32
    %c0_i32_1 = arith.constant 0 : i32
    return %c0_i32, %c0_i32_0 : i32, i32
  }
  func.func @transform_5(%arg0: i32) -> (i32, i32) {
    %c0_i32 = arith.constant 0 : i32
    %c0_i32_0 = arith.constant 0 : i32
    %c0_i32_1 = arith.constant 0 : i32
    return %c0_i32, %c0_i32_0 : i32, i32
  }
  func.func @transform_6(%arg0: i32) -> (i32, i32, i32) {
    %c0_i32 = arith.constant 0 : i32
    %c0_i32_0 = arith.constant 0 : i32
    %c0_i32_1 = arith.constant 0 : i32
    %c0_i32_2 = arith.constant 0 : i32
    return %c0_i32, %c0_i32_0, %c0_i32_1 : i32, i32, i32
  }
  func.func @transform_7(%arg0: i32) -> (i32, i32) {
    %c0_i32 = arith.constant 0 : i32
    %c0_i32_0 = arith.constant 0 : i32
    %c0_i32_1 = arith.constant 0 : i32
    return %c0_i32, %c0_i32_0 : i32, i32
  }
  func.func @transform_8(%arg0: i32) -> (i32, i32, i32, i32) {
    %c0_i32 = arith.constant 0 : i32
    %c0_i32_0 = arith.constant 0 : i32
    %c0_i32_1 = arith.constant 0 : i32
    %c0_i32_2 = arith.constant 0 : i32
    return %arg0, %c0_i32, %c0_i32_0, %c0_i32_1 : i32, i32, i32, i32
  }
}

</mosaic_0001>

<bundles_post_ra>
// kernel: bi_global_cha_fuse_reduce.2
= control target key start
LH: loop header
LB: loop body
LE: loop exit
PB: predicated region body
PF: predicated region fallthrough
CT: control target
= control target key end

     0   :  { %s1366_s25 = smov 0   ;;  %s1368_s26 = smov 0   ;;  %s1508_s0 = inlined_call_operand.vmem [shape: bf16[2,64,16], index: 0, kind: input, shape index: {}]   ;;  %s1509_s1 = inlined_call_operand.vmem [shape: bf16[2,64,64], index: 1, kind: input, shape index: {}]   ;;  %s1510_s2 = inlined_call_operand.vmem [shape: bf16[16,64], index: 2, kind: input, shape index: {}]   ;;  %s1511_s3 = inlined_call_operand.vmem [shape: f32[1,64], index: 3, kind: input, shape index: {}]   ;;  %s1512_s4 = inlined_call_operand.vmem [shape: bf16[64,16], index: 4, kind: input, shape index: {}]   ;;  %s1513_s5 = inlined_call_operand.vmem [shape: f32[1,16], index: 5, kind: input, shape index: {}]   ;;  %s1514_s6 = inlined_call_operand.vmem [shape: bf16[16,64], index: 6, kind: input, shape index: {}]   ;;  %s1515_s7 = inlined_call_operand.vmem [shape: f32[1,64], index: 7, kind: input, shape index: {}]   ;;  %s1516_s8 = inlined_call_operand.vmem [shape: bf16[64,16], index: 8, kind: input, shape index: {}]   ;;  %s1517_s9 = inlined_call_operand.vmem [shape: f32[1,16], index: 9, kind: input, shape index: {}]   ;;  %s1518_s10 = inlined_call_operand.vmem [shape: bf16[16,64], index: 10, kind: input, shape index: {}]   ;;  %s1519_s11 = inlined_call_operand.vmem [shape: f32[1,64], index: 11, kind: input, shape index: {}]   ;;  %s1520_s12 = inlined_call_operand.vmem [shape: f32[2,1,64], index: 12, kind: output, shape index: {0}]   ;;  %s1521_s13 = inlined_call_operand.vmem [shape: f32[2,1,64], index: 13, kind: output, shape index: {1}]  }
   0x1   :  { %s1370_s27 = smov 0  }
   0x2 LB: > { %s36_s28 = sadd.s32 1, %s1288_s26  ;;  %p1104_p0 = scmp.ge.s32.totalorder %s1292_s27, 1  ;;  %s1292_s27 = sphi %s1370_s27, %s24_s27   ;;  %s1288_s26 = sphi %s1368_s26, %s1523_s26   ;;  %s1284_s25 = sphi %s1366_s25, %s1522_s25  }
   0x3   : > { %p38_p1 = scmp.ge.s32.totalorder %s36_s28, 2  ;;  %p426_p2 = scmp.lt.s32.totalorder %s1292_s27, 3 }
   0x5   : > { %s1525_s28 = smov (%p38_p1, %s36_s28), 0  ;;  %p427_p3 = pnand %p1104_p0, %p426_p2 }
   0x6   : > { %p485_p4 = scmp.lt.s32.totalorder (!%p427_p3), %s1284_s25, 1 }
   0x7   : > { %430 = sbr.rel (%p427_p3) target bundleno = 709 (0x2c5), region = 68 }
   0xc   : > { %v1247_v0 = vld [vmem:[%s1510_s2] sm:$0xff]   ;;  %s1527_s25 = smov (!%p485_p4, %s1284_s25), 1  ;;  %vm561_vm0 = vcmask 130048   ;;  %vm648_vm1 = vcmask 523264   ;;  %vm515_vm2 = vcmask 516096   ;;  %v1294_v29 = vmov 0.0  }
   0xd   : > { %1175 = vmatprep.subr.bf16.mxu0 %v1247_v0  ;;  %s1135_s14 = sshll.u32 %s1527_s25, 5  ;;  %516 = vst.msk [vmem:[#allocation2] sm:$0x1] %vm515_vm2, %v1294_v29  ;;  %517 = vst.msk [vmem:[#allocation3] sm:$0x1] %vm515_vm2, %v1294_v29  ;;  %1185 = vmatprep.subr.bf16.mxu1 %v1294_v29  ;;  %v1252_v35 = vld [vmem:[%s1512_s4 + $0x18] sm:$0xff]  }
   0xe   : > { %1176 = vmatpush3.bf16.msra.mxu0 %v1247_v0  ;;  %s492_s17 = scalar_lea.vmem %s1508_s0, %s1135_s14  ;;  %s502_s20 = scalar_lea.vmem %s1509_s1, %s1135_s14  ;;  %1186 = vmatpush3.bf16.msra.mxu1 %v1252_v35  ;;  %v1253_v37 = vld [vmem:[%s1512_s4 + $0x10] sm:$0xff]   ;;  %v1254_v38 = vld [vmem:[%s1512_s4 + $0x8] sm:$0xff]   ;;  %vm1295_vm3 = vmmov 0   ;;  %v1255_v40 = vld [vmem:[%s1512_s4] sm:$0xff]  }
   0xf   : > { %v1248_v1 = vld [vmem:[%s492_s17] sm:$0xff]   ;;  %v1249_v2 = vld [vmem:[%s492_s17 + $0x8] sm:$0xff]   ;;  %v1250_v3 = vld [vmem:[%s492_s17 + $0x10] sm:$0xff]   ;;  %1197 = vmatprep.subr.bf16.mxu0 %v1294_v29  ;;  %1187 = vmatprep.subr.bf16.mxu1 %v1294_v29  ;;  %s506_s14 = scalar_lea.vmem %s1520_s12, %s1527_s25 }
  0x10   : > { %1177 = vmatprep.mubr.msk.bf16.mxu0 %vm561_vm0, %v1248_v1  ;;  %v1251_v4 = vld [vmem:[%s492_s17 + $0x18] sm:$0xff]   ;;  %v1138_v5 = vld [vmem:[%s502_s20] sm:$0xff]   ;;  %v1153_v8 = vld [vmem:[%s502_s20 + $0x8] sm:$0xff]   ;;  %1193 = vmatprep.mubr.msk.bf16.mxu1 %vm1295_vm3, %v1294_v29  ;;  %s509_s17 = scalar_lea.vmem %s1521_s13, %s1527_s25 }
  0x11   : > { %1178 = vmatmul.mubr.msk.bf16.vlgmr.msra.gmra.mxu0 %vm561_vm0, %v1249_v2  ;;  %v1139_v6 = vunpack.c.l.bf16 %v1138_v5  ;;  %v1140_v7 = vunpack.c.h.bf16 %v1138_v5  ;;  %v1143_v9 = vunpack.c.l.bf16 %v1153_v8  ;;  %v1144_v13 = vunpack.c.h.bf16 %v1153_v8  ;;  %v1154_v15 = vld [vmem:[%s502_s20 + $0x10] sm:$0xff]   ;;  %v1155_v22 = vld [vmem:[%s502_s20 + $0x18] sm:$0xff]   ;;  %v1260_v45 = vld [vmem:[%s1514_s6] sm:$0xff]  }
  0x12   : > { %1181 = vmatprep.mubr.msk.bf16.mxu0 %vm561_vm0, %v1250_v3  ;;  %v1147_v17 = vunpack.c.l.bf16 %v1154_v15  ;;  %v1148_v20 = vunpack.c.h.bf16 %v1154_v15  ;;  %v1151_v24 = vunpack.c.l.bf16 %v1155_v22  ;;  %v1152_v27 = vunpack.c.h.bf16 %v1155_v22  ;;  %1188 = vmatpush3.bf16.msra.mxu1 %v1253_v37  ;;  %v1109_v47 = vld [vmem:[%s1511_s3] ss:$0 sm:$0xff]  ;;  %v1257_v35 = vld [vmem:[%s1516_s8 + $0x10] sm:$0xff]  }
  0x13   : > { %v690_v10 = vsel %vm648_vm1, %v1139_v6, 0.0  ;;  %v691_v11 = vsel %vm648_vm1, %v1140_v7, 0.0  ;;  %v693_v14 = vsel %vm648_vm1, %v1143_v9, 0.0  ;;  %v695_v18 = vsel %vm648_vm1, %v1144_v13, 0.0  ;;  %1189 = vmatprep.subr.bf16.mxu1 %v1294_v29  ;;  %1198 = vmatpush3.bf16.msra.mxu0 %v1260_v45 }
  0x14   : > { %v692_v12 = vadd.f32 %v691_v11, %v690_v10  ;;  %v697_v21 = vsel %vm648_vm1, %v1147_v17, 0.0  ;;  %v699_v25 = vsel %vm648_vm1, %v1148_v20, 0.0  ;;  %v701_v28 = vsel %vm648_vm1, %v1151_v24, 0.0  ;;  %v673_v43 = vld [vmem:[#allocation3] sm:$0x1]  ;;  %1215 = vmatprep.subr.bf16.mxu0 %v1294_v29 }
  0x15   : > { %v703_v31 = vsel %vm648_vm1, %v1152_v27, 0.0  ;;  %v647_v27 = vld [vmem:[#allocation2] sm:$0x1] }
  0x16   : > { %v694_v16 = vadd.f32 %v693_v14, %v692_v12  ;;  %1190 = vmatpush3.bf16.msra.mxu1 %v1254_v38 }
  0x17   : > { %1191 = vmatprep.subr.bf16.mxu1 %v1294_v29 }
  0x18   : > { %v696_v19 = vadd.f32 %v695_v18, %v694_v16 }
  0x19   : > { %1182 = vmatmul.mubr.msk.bf16.gmra.mxu0 %vm561_vm0, %v1251_v4 }
  0x1a   : > { %v698_v23 = vadd.f32 %v697_v21, %v696_v19  ;;  %1199 = vmatprep.mubr.msk.bf16.mxu0 %vm1295_vm3, %v1294_v29  ;;  %1192 = vmatpush3.bf16.msra.mxu1 %v1255_v40 }
  0x1b   : > { %1203 = vmatprep.subr.bf16.mxu1 %v1294_v29 }
  0x1c   : > { %v700_v26 = vadd.f32 %v699_v25, %v698_v23 }
  0x1e   : > { %v702_v30 = vadd.f32 %v701_v28, %v700_v26 }
  0x20   : > { %v704_v32 = vadd.f32 %v703_v31, %v702_v30 }
  0x22   : > { %v705_v33 = vrot.slane %v704_v32, 4 }
  0x24   : > { %v706_v34 = vadd.f32 %v705_v33, %v704_v32  ;;  %v1256_v33 = vld [vmem:[%s1516_s8 + $0x18] sm:$0xff]  }
  0x26   : > { %v707_v36 = vrot.slane %v706_v34, 2 }
  0x28   : > { %v708_v39 = vadd.f32 %v707_v36, %v706_v34  ;;  %v1258_v36 = vld [vmem:[%s1516_s8 + $0x8] sm:$0xff]  }
  0x2a   : > { %v709_v41 = vrot.slane %v708_v39, 1 }
  0x2c   : > { %v710_v42 = vadd.f32 %v709_v41, %v708_v39  ;;  %v1259_v39 = vld [vmem:[%s1516_s8] sm:$0xff]  }
  0x2d   : > { %v726_v41 = vld [vmem:[%s1513_s5] sm:$0x1] }
  0x2e   : > { %v711_v44 = vadd.f32 %v710_v42, %v673_v43 }
  0x30   : > { %712 = vst.msk [vmem:[#allocation3] sm:$0x1] %vm515_vm2, %v711_v44 }
  0x37   : > { %v856_v37 = vld [vmem:[#allocation3] sm:$0x1] }
  0x38   : > { %v857_v38 = vmul.f32 0.015625, %v856_v37 }
  0x3a   : > { %v870_v40 = vpack.c.bf16 %v857_v38, %v857_v38 }
  0xd1   : > { %v1179_v46 = vpop.f32.mrf.mxu0 }
  0xd2   : > { %v617_v51 = vadd.f32 %v1179_v46, %v1109_v47 }
  0xd3   : > { %v608_v48 = vpop.f32.mrf.mxu0 }
  0xd4   : > { %v609_v49 = vadd.f32 %v1109_v47, %v608_v48  ;;  %v641_v57 = vmax.f32 %v617_v51, 0.0 }
  0xd5   : > { %v1180_v50 = vpop.f32.mrf.mxu0 }
  0xd6   : > { %v639_v53 = vmax.f32 %v609_v49, 0.0  ;;  %v620_v54 = vadd.f32 %v1180_v50, %v1109_v47  ;;  %v652_v2 = vsel %vm648_vm1, %v641_v57, 0.0  ;;  %v866_v50 = vld [vmem:[%s1517_s9] sm:$0x1] }
  0xd7   : > { %v611_v52 = vpop.f32.mrf.mxu0 }
  0xd8   : > { %v612_v55 = vadd.f32 %v1109_v47, %v611_v52  ;;  %v649_v60 = vsel %vm648_vm1, %v639_v53, 0.0  ;;  %v642_v61 = vmax.f32 %v620_v54, 0.0 }
  0xd9   : > { %v1183_v56 = vpop.f32.mrf.mxu0 }
  0xda   : > { %v640_v58 = vmax.f32 %v612_v55, 0.0  ;;  %v633_v3 = vadd.f32 %v1183_v56, %v1109_v47  ;;  %v654_v7 = vsel %vm648_vm1, %v642_v61, 0.0 }
  0xdb   : > { %v624_v59 = vpop.f32.mrf.mxu0 }
  0xdc   : > { %v650_v62 = vsel %vm648_vm1, %v640_v58, 0.0  ;;  %v625_v63 = vadd.f32 %v1109_v47, %v624_v59  ;;  %v645_v11 = vmax.f32 %v633_v3, 0.0  ;;  %v729_v58 = vld [vmem:[%s1515_s7] sm:$0x1] }
  0xdd   : > { %v651_v0 = vadd.f32 %v650_v62, %v649_v60  ;;  %v1184_v1 = vpop.f32.mrf.mxu0 }
  0xde   : > { %v643_v4 = vmax.f32 %v625_v63, 0.0  ;;  %v636_v8 = vadd.f32 %v1184_v1, %v1109_v47  ;;  %v660_v18 = vsel %vm648_vm1, %v645_v11, 0.0  ;;  %v869_v1 = vld [vmem:[%s1519_s11] sm:$0x1] }
  0xdf   : > { %v653_v5 = vadd.f32 %v652_v2, %v651_v0  ;;  %v627_v6 = vpop.f32.mrf.mxu0 }
  0xe0   : > { %v628_v9 = vadd.f32 %v1109_v47, %v627_v6  ;;  %v656_v12 = vsel %vm648_vm1, %v643_v4, 0.0  ;;  %v646_v15 = vmax.f32 %v636_v8, 0.0  ;;  %v1261_v47 = vld [vmem:[%s1518_s10] sm:$0xff]  }
  0xe1   : > { %v655_v10 = vadd.f32 %v654_v7, %v653_v5 }
  0xe2   : > { %v644_v13 = vmax.f32 %v628_v9, 0.0  ;;  %v662_v20 = vsel %vm648_vm1, %v646_v15, 0.0 }
  0xe3   : > { %v657_v14 = vadd.f32 %v656_v12, %v655_v10 }
  0xe4   : > { %v658_v16 = vsel %vm648_vm1, %v644_v13, 0.0 }
  0xe5   : > { %v659_v17 = vadd.f32 %v658_v16, %v657_v14 }
  0xe7   : > { %v661_v19 = vadd.f32 %v660_v18, %v659_v17 }
  0xe9   : > { %v663_v21 = vadd.f32 %v662_v20, %v661_v19 }
  0xeb   : > { %v664_v22 = vrot.slane %v663_v21, 4 }
  0xed   : > { %v665_v23 = vadd.f32 %v664_v22, %v663_v21 }
  0xef   : > { %v666_v24 = vrot.slane %v665_v23, 2 }
  0xf1   : > { %v667_v25 = vadd.f32 %v666_v24, %v665_v23 }
  0xf3   : > { %v668_v26 = vrot.slane %v667_v25, 1 }
  0xf5   : > { %v669_v28 = vadd.f32 %v668_v26, %v667_v25 }
  0xf7   : > { %v670_v30 = vadd.f32 %v669_v28, %v647_v27 }
  0xf9   : > { %672 = vst.msk [vmem:[#allocation2] sm:$0x1] %vm515_vm2, %v670_v30 }
 0x100   : > { %v716_v31 = vld [vmem:[#allocation2] sm:$0x1] }
 0x101   : > { %v717_v32 = vmul.f32 0.015625, %v716_v31 }
 0x103   : > { %v730_v34 = vpack.c.bf16 %v717_v32, %v717_v32 }
 0x105   : > { %1194 = vmatmul.mubr.msk.bf16.vlgmr.msra.gmra.mxu1 %vm648_vm1, %v730_v34 }
 0x106   : > { %1204 = vmatpush3.bf16.msra.mxu1 %v1256_v33  ;;  %1211 = vmatprep.mubr.msk.bf16.mxu1 %vm1295_vm3, %v1294_v29 }
 0x107   : > { %1205 = vmatprep.subr.bf16.mxu1 %v1294_v29 }
 0x10a   : > { %1206 = vmatpush3.bf16.msra.mxu1 %v1257_v35 }
 0x10b   : > { %1207 = vmatprep.subr.bf16.mxu1 %v1294_v29 }
 0x10e   : > { %1208 = vmatpush3.bf16.msra.mxu1 %v1258_v36 }
 0x10f   : > { %1209 = vmatprep.subr.bf16.mxu1 %v1294_v29 }
 0x112   : > { %1210 = vmatpush3.bf16.msra.mxu1 %v1259_v39 }
 0x115   : > { %1212 = vmatmul.mubr.msk.bf16.vlgmr.msra.gmra.mxu1 %vm648_vm1, %v870_v40 }
 0x1c5   : > { %v792_v42 = vpop.f32.mrf.mxu1 }
 0x1c6   : > { %v793_v43 = vadd.f32 %v792_v42, %v726_v41 }
 0x1c7   : > { %v1195_v44 = vpop.f32.mrf.mxu1 }
 0x1c8   : > { %v798_v45 = vmax.f32 %v793_v43, 0.0 }
 0x1c9   : > { %v795_v46 = vpop.f32.mrf.mxu1 }
 0x1ca   : > { %v799_v48 = vpack.c.bf16 %v798_v45, %v798_v45 }
 0x1cb   : > { %v1196_v49 = vpop.f32.mrf.mxu1 }
 0x1cc   : > { %1200 = vmatmul.mubr.msk.bf16.vlgmr.msra.gmra.mxu0 %vm561_vm0, %v799_v48 }
 0x1cd   : > { %1216 = vmatpush3.bf16.msra.mxu0 %v1261_v47  ;;  %1217 = vmatprep.mubr.msk.bf16.mxu0 %vm1295_vm3, %v1294_v29 }
 0x1d5   : > { %v932_v51 = vpop.f32.mrf.mxu1 }
 0x1d6   : > { %v933_v52 = vadd.f32 %v932_v51, %v866_v50 }
 0x1d7   : > { %v1213_v53 = vpop.f32.mrf.mxu1 }
 0x1d8   : > { %v938_v54 = vmax.f32 %v933_v52, 0.0 }
 0x1d9   : > { %v935_v55 = vpop.f32.mrf.mxu1 }
 0x1da   : > { %v939_v56 = vpack.c.bf16 %v938_v54, %v938_v54 }
 0x1db   : > { %v1214_v57 = vpop.f32.mrf.mxu1 }
 0x1dc   : > { %1218 = vmatmul.mubr.msk.bf16.vlgmr.msra.gmra.mxu0 %vm561_vm0, %v939_v56 }
 0x28c   : > { %v843_v59 = vpop.f32.mrf.mxu0 }
 0x28d   : > { %v844_v60 = vadd.f32 %v843_v59, %v729_v58 }
 0x28e   : > { %v1201_v29 = vpop.f32.mrf.mxu0 }
 0x28f   : > { %v849_v61 = vsub.f32 0.0, %v844_v60 }
 0x290   : > { %v846_v62 = vpop.f32.mrf.mxu0 }
 0x291   : > { %v850_v63 = vmul.f32 1.442695, %v849_v61 }
 0x292   : > { %v1202_v0 = vpop.f32.mrf.mxu0 }
 0x293   : > { %1262 = vpow2.f32 %v850_v63 }
 0x29c   : > { %v983_v2 = vpop.f32.mrf.mxu0 }
 0x29d   : > { %v984_v3 = vadd.f32 %v983_v2, %v869_v1 }
 0x29e   : > { %v1219_v4 = vpop.f32.mrf.mxu0 }
 0x29f   : > { %v989_v5 = vsub.f32 0.0, %v984_v3 }
 0x2a0   : > { %v1263_v6 = vpop.eup %1262  ;;  %v986_v7 = vpop.f32.mrf.mxu0 }
 0x2a1   : > { %v852_v8 = vadd.f32 1.0, %v1263_v6  ;;  %v990_v9 = vmul.f32 1.442695, %v989_v5 }
 0x2a2   : > { %v1220_v10 = vpop.f32.mrf.mxu0 }
 0x2a3   : > { %1264 = vrcp.f32 %v852_v8 }
 0x2a4   : > { %1266 = vpow2.f32 %v990_v9 }
 0x2b0   : > { %v1265_v11 = vpop.eup %1264 }
 0x2b1   : > { %v1267_v12 = vpop.eup %1266  ;;  %v854_v13 = vmul.f32 2.0, %v1265_v11 }
 0x2b2   : > { %v992_v14 = vadd.f32 1.0, %v1267_v12 }
 0x2b3   : > { %855 = vst.msk [vmem:[%s506_s14] sm:$0x1] %vm515_vm2, %v854_v13 }
 0x2b4   : > { %1268 = vrcp.f32 %v992_v14 }
 0x2c1   : > { %v1269_v15 = vpop.eup %1268 }
 0x2c2   : > { %v994_v16 = vmul.f32 2.0, %v1269_v15 }
 0x2c4   : > { %995 = vst.msk [vmem:[%s509_s17] sm:$0x1] %vm515_vm2, %v994_v16 }
 0x2c5 PF: > { %s24_s27 = sadd.s32 1, %s1292_s27   ;;  %s1522_s25 = smov %s1288_s26 }
 0x2c6   : > { %p21_p5 = scmp.ge.s32.totalorder %s24_s27, 4   ;;  %s1523_s26 = smov %s1525_s28 }
 0x2c8   :  { %23 = sbr.rel (!%p21_p5) target bundleno = 2 (0x2), region = 121 }

// kernel: bi_global_cha_fuse_reduce.3
= control target key start
LH: loop header
LB: loop body
LE: loop exit
PB: predicated region body
PF: predicated region fallthrough
CT: control target
= control target key end

     0   :  { %13 = vsyncpa [#allocation3], 0  ;;  %s3496_s0 = inlined_call_operand.vmem [shape: bf16[2,8,8,64], index: 0, kind: input, shape index: {}]   ;;  %s3497_s1 = inlined_call_operand.vmem [shape: bf16[2,8,8,16], index: 1, kind: input, shape index: {}]   ;;  %s3498_s2 = inlined_call_operand.vmem [shape: f32[2,1,64], index: 2, kind: input, shape index: {}]   ;;  %s3499_s3 = inlined_call_operand.vmem [shape: f32[2,1,64], index: 3, kind: input, shape index: {}]   ;;  %s3500_s4 = inlined_call_operand.vmem [shape: bf16[16,64], index: 4, kind: input, shape index: {}]   ;;  %s3501_s5 = inlined_call_operand.vmem [shape: f32[1,64], index: 5, kind: input, shape index: {}]   ;;  %s3502_s6 = inlined_call_operand.vmem [shape: bf16[9,64,64], index: 6, kind: input, shape index: {}]   ;;  %s3503_s7 = inlined_call_operand.vmem [shape: f32[1,64], index: 7, kind: input, shape index: {}]   ;;  %s3504_s8 = inlined_call_operand.hbm [shape: f32[2,8,8,64], index: 8, kind: output, shape index: {}]  }
   0x1   :  { %15 = vsyncpa [#allocation3 + $0x1], 0  ;;  %s2758_s27 = smov 0   ;;  %s2760_s28 = smov 0  }
   0x2   :  { %s2762_s29 = smov 0   ;;  %s2764_s30 = smov 0  }
   0x3 LB: > { %s2779_s9 = sadd.s32 4294967295, %s2707_s30   ;;  %s2070_s10 = sadd.s32 4294967294, %s2707_s30   ;;  %s2707_s30 = sphi %s2764_s30, %s3518_s30   ;;  %s2703_s29 = sphi %s2762_s29, %s3517_s29   ;;  %s2699_s28 = sphi %s2760_s28, %s3516_s28   ;;  %s2695_s27 = sphi %s2758_s27, %s3515_s27  }
   0x4   : > { %s2783_s11 = sadd.s32 1, %s2707_s30   ;;  %s216_s12 = sadd.s32 1, %s2703_s29 }
   0x5   : > { %s213_s13 = ssub.s32 %s2707_s30, %s2783_s11  ;;  %p226_p0 = scmp.ne.s32.totalorder %s2703_s29, %s2699_s28 }
   0x6   : > { %p214_p1 = scmp.eq.s32.totalorder %s213_s13, 0  ;;  %p227_p2 = scmp.eq.s32.totalorder %s2779_s9, 1 }
   0x7   : > { %p232_p3 = scmp.ne.s32.totalorder %s2699_s28, %s2695_s27  ;;  %p233_p4 = scmp.eq.s32.totalorder %s2070_s10, 1 }
   0x8   : > { %s2794_s14 = scalar_select %p214_p1, %s2703_s29, %s216_s12  }
   0x9   : > { %p2796_p5 = por %p227_p2, %p226_p0  ;;  %p2800_p6 = por %p233_p4, %p232_p3 }
   0xa   : > { %p2073_p7 = scmp.ge.s32.totalorder %s2707_s30, 1  ;;  %p291_p8 = scmp.lt.s32.totalorder %s2707_s30, 3 }
   0xc   : > { %p292_p9 = pnand %p2073_p7, %p291_p8 }
   0xd   : > { %p336_p10 = scmp.lt.s32.totalorder (!%p292_p9), %s2779_s9, 1 }
   0xe   : > { %295 = sbr.rel (%p292_p9) target bundleno = 553 (0x229), region = 52 }
  0x13   : > { %v2606_v0 = vld [vmem:[%s3500_s4] sm:$0xff]   ;;  %s2811_s19 = scalar_select %p336_p10, %s2779_s9, 1  ;;  %vm396_vm0 = vcmask 130048   ;;  %v2611_v17 = vld [vmem:[%s3502_s6 + $0x18] sm:$0xff]   ;;  %v2612_v24 = vld [vmem:[%s3502_s6 + $0x10] sm:$0xff]   ;;  %vm632_vm1 = vcmask 1040384  }
  0x14   : > { %2402 = vmatprep.subr.bf16.mxu0 %v2606_v0  ;;  %v2613_v27 = vld [vmem:[%s3502_s6 + $0x8] sm:$0xff]   ;;  %v2614_v29 = vld [vmem:[%s3502_s6 + $0x38] sm:$0xff]   ;;  %v2615_v30 = vld [vmem:[%s3502_s6] sm:$0xff]   ;;  %vm633_vm2 = vsmask.f32 256  ;;  %v2709_v36 = vmov 0  }
  0x15   : > { %2403 = vmatpush3.bf16.msra.mxu0 %v2606_v0  ;;  %s2295_s20 = sshll.u32 %s2811_s19, 5  ;;  %s348_s13 = scalar_lea.vmem %s3498_s2, %s2811_s19  ;;  %2412 = vmatprep.subr.bf16.mxu1 %v2614_v29  ;;  %v2616_v31 = vld [vmem:[%s3502_s6 + $0x30] sm:$0xff]   ;;  %v2861_v32 = vld [vmem:[%s3502_s6 + $0x78] sm:$0xff]   ;;  %v2618_v33 = vld [vmem:[%s3502_s6 + $0x28] sm:$0xff]   ;;  %v563_v37 = vrot.slane %v2709_v36, 7  ;;  %vm644_vm4 = vcmask 1044480  }
  0x16   : > { %s345_s23 = scalar_lea.vmem %s3497_s1, %s2295_s20  ;;  %s340_s26 = scalar_lea.vmem %s3496_s0, %s2295_s20  ;;  %v2089_v6 = vld [vmem:[%s348_s13] ss:$0 sm:$0xff]  ;;  %2428 = vmatprep.subr.bf16.mxu0 %v2611_v17  ;;  %2413 = vmatpush3.bf16.msra.mxu1 %v2614_v29  ;;  %v2873_v35 = vld [vmem:[%s3502_s6 + $0x58] sm:$0xff]   ;;  %vm2876_vm3 = vmand %vm632_vm1, %vm633_vm2  ;;  %vm645_vm5 = vsmask.f32 4352  ;;  %vm1047_vm10 = vcmask 1042432  }
  0x17   : > { %v2607_v1 = vld [vmem:[%s345_s23] sm:$0xff]   ;;  %v2608_v2 = vld [vmem:[%s345_s23 + $0x8] sm:$0xff]   ;;  %v2609_v3 = vld [vmem:[%s345_s23 + $0x10] sm:$0xff]   ;;  %2414 = vmatprep.subr.bf16.mxu1 %v2616_v31  ;;  %v635_v39 = vsel %vm2876_vm3, 0, %v563_v37  ;;  %s351_s17 = scalar_lea.vmem %s3499_s3, %s2811_s19  ;;  %vm704_vm7 = vsmask.f32 3328 }
  0x18   : > { %2404 = vmatprep.mubr.msk.bf16.mxu0 %vm396_vm0, %v2607_v1  ;;  %v2610_v4 = vld [vmem:[%s345_s23 + $0x18] sm:$0xff]   ;;  %v2322_v5 = vld [vmem:[%s340_s26 + $0x8] sm:$0xff]   ;;  %v2307_v8 = vld [vmem:[%s340_s26] sm:$0xff]   ;;  %vm705_vm8 = vsmask.f32 7440  ;;  %vm1048_vm11 = vcmask 1046532  }
  0x19   : > { %2405 = vmatmul.mubr.msk.bf16.vlgmr.msra.gmra.mxu0 %vm396_vm0, %v2608_v2  ;;  %v2312_v7 = vunpack.c.l.bf16 %v2322_v5  ;;  %v2308_v10 = vunpack.c.l.bf16 %v2307_v8  ;;  %v2313_v12 = vunpack.c.h.bf16 %v2322_v5  ;;  %v2309_v14 = vunpack.c.h.bf16 %v2307_v8  ;;  %v2324_v16 = vld [vmem:[%s340_s26 + $0x18] sm:$0xff]   ;;  %v2323_v19 = vld [vmem:[%s340_s26 + $0x10] sm:$0xff]   ;;  %v2620_v34 = vld [vmem:[%s3502_s6 + $0x20] sm:$0xff]   ;;  %s333_s19 = sand.u32 1, %s2699_s28   ;;  %s2305_s23 = sshll.u32 %s2779_s9, 10 }
  0x1a   : > { %2408 = vmatprep.mubr.msk.bf16.mxu0 %vm396_vm0, %v2609_v3  ;;  %v2320_v18 = vunpack.c.l.bf16 %v2324_v16  ;;  %v2316_v21 = vunpack.c.l.bf16 %v2323_v19  ;;  %2429 = vmatpush3.bf16.msra.mxu0 %v2611_v17  ;;  %v2321_v23 = vunpack.c.h.bf16 %v2324_v16  ;;  %v2317_v26 = vunpack.c.h.bf16 %v2323_v19  ;;  %vm2882_vm6 = vmand %vm644_vm4, %vm645_vm5  ;;  %v2899_v45 = vld [vmem:[%s3501_s5] ss:$0 sm:$0xff]  ;;  %v3086_v38 = vld [vmem:[%s3502_s6 + $0xb8] sm:$0xff]   ;;  %s2074_s21 = sshll.u32 %s333_s19, 6  ;;  %s3446_s10 = scalar_lea.hbm %s3504_s8, %s2305_s23 }
  0x1b   : > { %v2824_v9 = vmul.f32 %v2312_v7, %v2089_v6  ;;  %v2826_v11 = vmul.f32 %v2308_v10, %v2089_v6  ;;  %v2828_v13 = vmul.f32 %v2313_v12, %v2089_v6  ;;  %v2830_v15 = vmul.f32 %v2309_v14, %v2089_v6  ;;  %2430 = vmatprep.subr.bf16.mxu0 %v2612_v24  ;;  %v2910_v51 = vld [vmem:[%s351_s17] ss:$0 sm:$0xff]  ;;  %vm2922_vm9 = vmor %vm704_vm7, %vm705_vm8  ;;  %s3415_s22 = scalar_lea.vmem [#allocation2], %s2074_s21  ;;  %s3456_s9 = scalar_lea.sflag [#allocation3], %s333_s19 }
  0x1c   : > { %v2835_v20 = vmul.f32 %v2320_v18, %v2089_v6  ;;  %v2837_v22 = vmul.f32 %v2316_v21, %v2089_v6  ;;  %v2842_v25 = vmul.f32 %v2321_v23, %v2089_v6  ;;  %v2847_v28 = vmul.f32 %v2317_v26, %v2089_v6  ;;  %2415 = vmatpush3.bf16.msra.mxu1 %v2616_v31  ;;  %vm2945_vm13 = vmor %vm1047_vm10, %vm1048_vm11  ;;  %s1978_s24 = sshll.u32 %s3415_s22, 4  ;;  %s2710_s13 = smov [#allocation2]   ;;  %s3448_s24 = int_to_ptr.vmem [resolvable:$true] %s1978_s24 }
  0x1d   : > { %2416 = vmatprep.subr.bf16.mxu1 %v2618_v33  ;;  %v2888_v41 = vsel %vm2882_vm6, %v635_v39, 0  ;;  %vm864_vm12 = vcmask 523264   ;;  %s2647_s12 = scalar_lea.vmem %s3448_s24, 1024  ;;  %s2651_s17 = sshll.u32 %s2710_s13, 4  ;;  %s2652_s17 = int_to_ptr.vmem [resolvable:$false] %s2651_s17 }
  0x1e   : > { %2431 = vmatpush3.bf16.msra.mxu0 %v2612_v24  ;;  %v2892_v42 = vcombine.low %v2888_v41, %v2888_v41  ;;  %v2907_v49 = vcombine.high %v2888_v41, %v2888_v41  ;;  %p2648_p11 = scmp.ne.s32.totalorder %s3448_s24, %s2647_s12  ;;  %s2653_s18 = scalar_lea.vmem %s2652_s17, 2048 }
  0x1f   : > { %2432 = vmatprep.subr.bf16.mxu0 %v2613_v27  ;;  %p2654_p0 = scmp.lt.s32.totalorder %s3448_s24, %s2652_s17  ;;  %p2655_p1 = scmp.lt.s32.totalorder %s2653_s18, %s2647_s12 }
  0x20   : > { %2417 = vmatpush3.bf16.msra.mxu1 %v2618_v33  ;;  %v708_v43 = vshrl.u32 %v2892_v42, 16  ;;  %v711_v44 = vshll.u32 %v2892_v42, 16  ;;  %v717_v54 = vshll.u32 %v2907_v49, 16  ;;  %v1052_v5 = vrot.slane %v2907_v49, 5  ;;  %p2649_p12 = pnand %p2648_p11, %p2796_p5 }
  0x21   : > { %2409 = vmatmul.mubr.msk.bf16.gmra.mxu0 %vm396_vm0, %v2610_v4  ;;  %2418 = vmatprep.subr.bf16.mxu1 %v2620_v34  ;;  %v2147_v19 = vrot.slane %v2892_v42, 9  ;;  %p2656_p2 = por %p2655_p1, %p2654_p0 }
  0x22   : > { %2433 = vmatpush3.bf16.msra.mxu0 %v2613_v27  ;;  %v710_v46 = vrot.slane %v708_v43, 4  ;;  %v713_v47 = vrot.slane %v711_v44, 5  ;;  %v719_v63 = vrot.slane %v717_v54, 5  ;;  %p2650_p13 = pneg %p2649_p12 }
  0x23   : > { %2434 = vmatprep.subr.bf16.mxu0 %v2615_v30 }
  0x24   : > { %2419 = vmatpush3.bf16.msra.mxu1 %v2620_v34  ;;  %v714_v53 = vor.u32 %v713_v47, %v710_v46  ;;  %p2657_p3 = pnand %p2656_p2, %p2650_p13 }
  0x25   : > { %2444 = vmatprep.subr.bf16.mxu1 %v2873_v35 }
  0x26   : > { %2435 = vmatpush3.bf16.msra.mxu0 %v2615_v30  ;;  %v715_v62 = vrot.slane %v714_v53, 4 }
  0x27   : > { %2460 = vmatprep.subr.bf16.mxu0 %v2861_v32 }
  0x28   : > { %v2929_v16 = vsel %vm2922_vm9, %v715_v62, %v719_v63 }
  0xd9   : > { %v2406_v48 = vpop.f32.mrf.mxu0 }
  0xda   : > { %v452_v50 = vadd.f32 %v2406_v48, %v2899_v45 }
  0xdb   : > { %v443_v52 = vpop.f32.mrf.mxu0 }
  0xdc   : > { %v476_v55 = vmax.f32 %v452_v50, 0.0  ;;  %v444_v56 = vadd.f32 %v2899_v45, %v443_v52 }
  0xdd   : > { %v2407_v57 = vpop.f32.mrf.mxu0 }
  0xde   : > { %v522_v58 = vmul.f32 %v2910_v51, %v476_v55  ;;  %v474_v59 = vmax.f32 %v444_v56, 0.0  ;;  %v455_v60 = vadd.f32 %v2407_v57, %v2899_v45  ;;  %v2633_v55 = vld [vmem:[%s3502_s6 + $0xf8] sm:$0xff]  }
  0xdf   : > { %v446_v61 = vpop.f32.mrf.mxu0 }
  0xe0   : > { %v530_v0 = vadd.f32 %v522_v58, %v2824_v9  ;;  %v520_v1 = vmul.f32 %v2910_v51, %v474_v59  ;;  %v477_v2 = vmax.f32 %v455_v60, 0.0  ;;  %v447_v3 = vadd.f32 %v2899_v45, %v446_v61 }
  0xe1   : > { %v2410_v4 = vpop.f32.mrf.mxu0  ;;  %v2955_v58 = vsel %vm2945_vm13, %v2147_v19, %v1052_v5 }
  0xe2   : > { %v2299_v6 = vpack.c.bf16 %v530_v0, %v530_v0  ;;  %v528_v7 = vadd.f32 %v520_v1, %v2826_v11  ;;  %v523_v8 = vmul.f32 %v2910_v51, %v477_v2  ;;  %v475_v10 = vmax.f32 %v447_v3, 0.0 }
  0xe3   : > { %v468_v9 = vadd.f32 %v2410_v4, %v2899_v45  ;;  %v459_v14 = vpop.f32.mrf.mxu0 }
  0xe4   : > { %v582_v17 = vshrl.u32 %v2299_v6, 16  ;;  %v2297_v18 = vpack.c.bf16 %v528_v7, %v528_v7  ;;  %v531_v11 = vadd.f32 %v523_v8, %v2828_v13  ;;  %v585_v21 = vshll.u32 %v2299_v6, 16 }
  0xe5   : > { %v521_v23 = vmul.f32 %v2910_v51, %v475_v10  ;;  %v480_v24 = vmax.f32 %v468_v9, 0.0  ;;  %v460_v26 = vadd.f32 %v2899_v45, %v459_v14  ;;  %v2411_v27 = vpop.f32.mrf.mxu0 }
  0xe6   : > { %v584_v29 = vrot.slane %v582_v17, 7  ;;  %v568_v30 = vshrl.u32 %v2297_v18, 16  ;;  %v571_v31 = vshll.u32 %v2297_v18, 16  ;;  %v2300_v33 = vpack.c.bf16 %v531_v11, %v531_v11 }
  0xe7   : > { %v529_v34 = vadd.f32 %v521_v23, %v2830_v15  ;;  %v526_v36 = vmul.f32 %v2910_v51, %v480_v24  ;;  %v478_v37 = vmax.f32 %v460_v26, 0.0  ;;  %v471_v13 = vadd.f32 %v2411_v27, %v2899_v45  ;;  %v462_v39 = vpop.f32.mrf.mxu0 }
  0xe8   : > { %v587_v42 = vor.u32 %v585_v21, %v584_v29  ;;  %v570_v43 = vrot.slane %v568_v30, 7  ;;  %v589_v44 = vshrl.u32 %v2300_v33, 16  ;;  %v592_v46 = vshll.u32 %v2300_v33, 16 }
  0xe9   : > { %v2298_v47 = vpack.c.bf16 %v529_v34, %v529_v34  ;;  %v534_v48 = vadd.f32 %v526_v36, %v2835_v20  ;;  %v524_v49 = vmul.f32 %v2910_v51, %v478_v37  ;;  %v481_v50 = vmax.f32 %v471_v13, 0.0 }
  0xea   : > { %v638_v52 = vsel %vm2876_vm3, 0, %v587_v42  ;;  %v573_v15 = vor.u32 %v571_v31, %v570_v43  ;;  %v591_v53 = vrot.slane %v589_v44, 7  ;;  %v463_v54 = vadd.f32 %v2899_v45, %v462_v39  ;;  %v2619_v31 = vld [vmem:[%s3502_s6 + $0x70] sm:$0xff]  }
  0xeb   : > { %v2951_v56 = vsel %vm2882_vm6, %v638_v52, 0  ;;  %v575_v20 = vshrl.u32 %v2298_v47, 16  ;;  %v2303_v57 = vpack.c.bf16 %v534_v48, %v534_v48  ;;  %v578_v60 = vshll.u32 %v2298_v47, 16 }
  0xec   : > { %v636_v59 = vsel %vm2876_vm3, 0, %v573_v15  ;;  %v594_v45 = vor.u32 %v592_v46, %v591_v53  ;;  %v532_v61 = vadd.f32 %v524_v49, %v2837_v22  ;;  %v527_v1 = vmul.f32 %v2910_v51, %v481_v50 }
  0xed   : > { %v577_v62 = vrot.slane %v575_v20, 7  ;;  %v610_v63 = vshrl.u32 %v2303_v57, 16  ;;  %v613_v0 = vshll.u32 %v2303_v57, 16  ;;  %v479_v4 = vmax.f32 %v463_v54, 0.0 }
  0xee   : > { %v639_v2 = vsel %vm2876_vm3, 0, %v594_v45  ;;  %v2301_v3 = vpack.c.bf16 %v532_v61, %v532_v61  ;;  %v2965_v5 = vsel %vm2882_vm6, %v636_v59, 0  ;;  %v535_v8 = vadd.f32 %v527_v1, %v2842_v25 }
  0xef   : > { %v580_v6 = vor.u32 %v578_v60, %v577_v62  ;;  %v612_v7 = vrot.slane %v610_v63, 7  ;;  %v2135_v22 = vcombine.low %v2888_v41, %v2965_v5  ;;  %v2972_v10 = vcombine.low %v2951_v56, %v2951_v56 }
  0xf0   : > { %v596_v9 = vshrl.u32 %v2301_v3, 16  ;;  %v525_v14 = vmul.f32 %v2910_v51, %v479_v4  ;;  %v2977_v17 = vsel %vm2882_vm6, %v639_v2, 0  ;;  %v599_v19 = vshll.u32 %v2301_v3, 16 }
  0xf1   : > { %v637_v18 = vsel %vm2876_vm3, 0, %v580_v6  ;;  %v615_v11 = vor.u32 %v613_v0, %v612_v7  ;;  %v2304_v25 = vpack.c.bf16 %v535_v8, %v535_v8  ;;  %2436 = vmatprep.mubr.msk.bf16.mxu0 %vm864_vm12, %v2135_v22  ;;  %v2184_v51 = vcombine.low %v2951_v56, %v2977_v17  ;;  %v2623_v6 = vld [vmem:[%s3502_s6 + $0x60] sm:$0xff]  }
  0xf2   : > { %v2984_v21 = vsel %vm2882_vm6, %v637_v18, 0  ;;  %v598_v23 = vrot.slane %v596_v9, 7  ;;  %v533_v24 = vadd.f32 %v525_v14, %v2847_v28  ;;  %v2997_v30 = vcombine.low %v2977_v17, %v2977_v17 }
  0xf3   : > { %v2991_v26 = vcombine.low %v2984_v21, %v2951_v56  ;;  %v642_v27 = vsel %vm2876_vm3, 0, %v615_v11  ;;  %v617_v29 = vshrl.u32 %v2304_v25, 16  ;;  %v620_v34 = vshll.u32 %v2304_v25, 16 }
  0xf4   : > { %v3004_v28 = vsel %vm2882_vm6, %v642_v27, 0  ;;  %v601_v33 = vor.u32 %v599_v19, %v598_v23  ;;  %v2302_v36 = vpack.c.bf16 %v533_v24, %v533_v24  ;;  %v3014_v39 = vcombine.low %v2965_v5, %v2965_v5 }
  0xf5   : > { %v3008_v37 = vcombine.low %v3004_v28, %v3004_v28  ;;  %v619_v13 = vrot.slane %v617_v29, 7  ;;  %2437 = vmatmul.mubr.msk.bf16.vlgmr.msra.gmra.mxu0 %vm864_vm12, %v2991_v26  ;;  %v3018_v42 = vcombine.high %v2965_v5, %v2965_v5  ;;  %v3025_v47 = vcombine.low %v2984_v21, %v2984_v21 }
  0xf6   : > { %v640_v43 = vsel %vm2876_vm3, 0, %v601_v33  ;;  %v603_v44 = vshrl.u32 %v2302_v36, 16  ;;  %v606_v46 = vshll.u32 %v2302_v36, 16  ;;  %2461 = vmatpush3.bf16.msra.mxu0 %v2861_v32  ;;  %v3033_v50 = vcombine.high %v2984_v21, %v2984_v21  ;;  %v2621_v32 = vld [vmem:[%s3502_s6 + $0x68] sm:$0xff]  }
  0xf7   : > { %v622_v48 = vor.u32 %v620_v34, %v619_v13  ;;  %v3029_v49 = vsel %vm2882_vm6, %v640_v43, 0  ;;  %2462 = vmatprep.subr.bf16.mxu0 %v2619_v31  ;;  %v3037_v52 = vcombine.high %v2951_v56, %v2951_v56  ;;  %v3052_v20 = vcombine.high %v2977_v17, %v2977_v17 }
  0xf8   : > { %v605_v15 = vrot.slane %v603_v44, 7  ;;  %v3044_v53 = vcombine.low %v3029_v49, %v3029_v49  ;;  %v3048_v54 = vcombine.low %v2977_v17, %v3029_v49  ;;  %v722_v59 = vshrl.u32 %v3014_v39, 16 }
  0xf9   : > { %v643_v57 = vsel %vm2876_vm3, 0, %v622_v48  ;;  %v725_v45 = vshll.u32 %v3014_v39, 16  ;;  %v731_v60 = vshll.u32 %v3018_v42, 16  ;;  %v3063_v62 = vcombine.high %v3004_v28, %v3004_v28 }
  0xfa   : > { %v608_v61 = vor.u32 %v606_v46, %v605_v15  ;;  %2440 = vmatprep.mubr.msk.bf16.mxu0 %vm864_vm12, %v3048_v54  ;;  %2463 = vmatpush3.bf16.msra.mxu0 %v2619_v31  ;;  %v736_v63 = vshrl.u32 %v3025_v47, 16  ;;  %v739_v0 = vshll.u32 %v3025_v47, 16  ;;  %v3069_v1 = vsel %vm2882_vm6, %v643_v57, 0 }
  0xfb   : > { %v724_v2 = vrot.slane %v722_v59, 4  ;;  %v727_v3 = vrot.slane %v725_v45, 5  ;;  %v745_v4 = vshll.u32 %v3033_v50, 16  ;;  %2464 = vmatprep.subr.bf16.mxu0 %v2621_v32  ;;  %v733_v7 = vrot.slane %v731_v60, 5 }
  0xfc   : > { %v738_v8 = vrot.slane %v736_v63, 4  ;;  %v741_v22 = vrot.slane %v739_v0, 5  ;;  %v750_v9 = vshrl.u32 %v2972_v10, 16  ;;  %v641_v14 = vsel %vm2876_vm3, 0, %v608_v61 }
  0xfd   : > { %v728_v18 = vor.u32 %v727_v3, %v724_v2  ;;  %v753_v11 = vshll.u32 %v2972_v10, 16  ;;  %v759_v19 = vshll.u32 %v3037_v52, 16  ;;  %v764_v24 = vshrl.u32 %v2997_v30, 16 }
  0xfe   : > { %v742_v25 = vor.u32 %v741_v22, %v738_v8  ;;  %v752_v23 = vrot.slane %v750_v9, 4  ;;  %v767_v27 = vshll.u32 %v2997_v30, 16  ;;  %2465 = vmatpush3.bf16.msra.mxu0 %v2621_v32  ;;  %v747_v31 = vrot.slane %v745_v4, 5 }
  0xff   : > { %v729_v29 = vrot.slane %v728_v18, 4  ;;  %v755_v33 = vrot.slane %v753_v11, 5  ;;  %v773_v34 = vshll.u32 %v3052_v20, 16  ;;  %2466 = vmatprep.subr.bf16.mxu0 %v2623_v6  ;;  %v766_v13 = vrot.slane %v764_v24, 4 }
 0x100   : > { %v743_v36 = vrot.slane %v742_v25, 4  ;;  %v769_v43 = vrot.slane %v767_v27, 5  ;;  %v806_v44 = vshrl.u32 %v3008_v37, 16  ;;  %v761_v32 = vrot.slane %v759_v19, 5 }
 0x101   : > { %v3091_v46 = vsel %vm2922_vm9, %v729_v29, %v733_v7  ;;  %v756_v48 = vor.u32 %v755_v33, %v752_v23  ;;  %v809_v15 = vshll.u32 %v3008_v37, 16  ;;  %v775_v45 = vrot.slane %v773_v34, 5  ;;  %v2624_v23 = vld [vmem:[%s3502_s6 + $0x50] sm:$0xff]  }
 0x102   : > { %v3096_v57 = vsel %vm2922_vm9, %v743_v36, %v747_v31  ;;  %v770_v59 = vor.u32 %v769_v43, %v766_v13  ;;  %v808_v60 = vrot.slane %v806_v44, 4  ;;  %2467 = vmatpush3.bf16.msra.mxu0 %v2623_v6  ;;  %v815_v0 = vshll.u32 %v3063_v62, 16 }
 0x103   : > { %v757_v61 = vrot.slane %v756_v48, 4  ;;  %v811_v63 = vrot.slane %v809_v15, 5  ;;  %v2123_v2 = vcombine.low %v2929_v16, %v3091_v46  ;;  %2492 = vmatprep.subr.bf16.mxu0 %v3086_v38  ;;  %v1056_v4 = vrot.slane %v3018_v42, 5 }
 0x104   : > { %v771_v3 = vrot.slane %v770_v59, 4  ;;  %v3105_v7 = vcombine.low %v3069_v1, %v3069_v1  ;;  %v3109_v8 = vcombine.high %v3069_v1, %v3069_v1  ;;  %v2205_v9 = vcombine.low %v3091_v46, %v3096_v57  ;;  %v2640_v46 = vld [vmem:[%s3502_s6 + $0xd0] sm:$0xff]  }
 0x105   : > { %v3113_v6 = vsel %vm2922_vm9, %v757_v61, %v761_v32  ;;  %v812_v22 = vor.u32 %v811_v63, %v808_v60  ;;  %2420 = vmatprep.mubr.msk.bf16.mxu1 %vm864_vm12, %v2123_v2  ;;  %v3120_v42 = vsel %vm2882_vm6, %v641_v14, 0  ;;  %v817_v24 = vrot.slane %v815_v0, 5 }
 0x106   : > { %v3124_v18 = vsel %vm2922_vm9, %v771_v3, %v775_v45  ;;  %v3128_v11 = vcombine.low %v3096_v57, %v3113_v6  ;;  %v1340_v19 = vshrl.u32 %v3105_v7, 16  ;;  %v1343_v25 = vshll.u32 %v3105_v7, 16  ;;  %v2641_v57 = vld [vmem:[%s3502_s6 + $0x118] sm:$0xff]  }
 0x107   : > { %v1349_v40 = vshll.u32 %v3109_v8, 16  ;;  %v2206_v14 = vcombine.low %v3113_v6, %v3124_v18  ;;  %v3140_v27 = vcombine.low %v3120_v42, %v3120_v42  ;;  %v3144_v33 = vcombine.low %v3120_v42, %v3004_v28  ;;  %v2644_v6 = vld [vmem:[%s3502_s6 + $0xc0] sm:$0xff]  }
 0x108   : > { %v1342_v29 = vrot.slane %v1340_v19, 4  ;;  %v1345_v31 = vrot.slane %v1343_v25, 5  ;;  %v2183_v34 = vcombine.low %v2965_v5, %v2984_v21  ;;  %2421 = vmatmul.mubr.msk.bf16.vlgmr.msra.gmra.mxu1 %vm864_vm12, %v3128_v11  ;;  %v813_v36 = vrot.slane %v812_v22, 4 }
 0x109   : > { %v1351_v13 = vrot.slane %v1349_v40, 5  ;;  %2445 = vmatpush3.bf16.msra.mxu1 %v2873_v35  ;;  %v3153_v43 = vcombine.high %v3029_v49, %v3029_v49  ;;  %v778_v44 = vshrl.u32 %v3044_v53, 16  ;;  %2441 = vmatmul.mubr.msk.bf16.gmra.mxu0 %vm864_vm12, %v3144_v33  ;;  %v781_v5 = vshll.u32 %v3044_v53, 16  ;;  %v2626_v35 = vld [vmem:[%s3502_s6 + $0x48] sm:$0xff]  }
 0x10a   : > { %v1346_v48 = vor.u32 %v1345_v31, %v1342_v29  ;;  %2446 = vmatprep.subr.bf16.mxu1 %v2624_v23  ;;  %v2185_v21 = vcombine.low %v3029_v49, %v3120_v42  ;;  %v3166_v32 = vcombine.high %v3120_v42, %v3120_v42  ;;  %2468 = vmatprep.mubr.msk.bf16.mxu0 %vm864_vm12, %v2183_v34  ;;  %v792_v45 = vshrl.u32 %v3140_v27, 16 }
 0x10b   : > { %v780_v15 = vrot.slane %v778_v44, 4  ;;  %v787_v59 = vshll.u32 %v3153_v43, 16  ;;  %v795_v60 = vshll.u32 %v3140_v27, 16  ;;  %v783_v63 = vrot.slane %v781_v5, 5 }
 0x10c   : > { %v1347_v61 = vrot.slane %v1346_v48, 4  ;;  %v801_v49 = vshll.u32 %v3166_v32, 16  ;;  %v2148_v0 = vrot.slane %v3014_v39, 9  ;;  %v3176_v2 = vsel %vm2922_vm9, %v813_v36, %v817_v24  ;;  %v2628_v24 = vld [vmem:[%s3502_s6 + $0x40] sm:$0xff]  }
 0x10d   : > { %2447 = vmatpush3.bf16.msra.mxu1 %v2624_v23  ;;  %v794_v3 = vrot.slane %v792_v45, 4  ;;  %v797_v22 = vrot.slane %v795_v60, 5  ;;  %v2186_v42 = vcombine.low %v3004_v28, %v3069_v1  ;;  %v784_v25 = vor.u32 %v783_v63, %v780_v15  ;;  %v2634_v28 = vld [vmem:[%s3502_s6 + $0x88] sm:$0xff]  }
 0x10e   : > { %v3182_v19 = vsel %vm2922_vm9, %v1347_v61, %v1351_v13  ;;  %v789_v40 = vrot.slane %v787_v59, 5  ;;  %2448 = vmatprep.subr.bf16.mxu1 %v2626_v35  ;;  %v1057_v39 = vsel %vm2945_vm13, %v2148_v0, %v1056_v4  ;;  %v803_v31 = vrot.slane %v801_v49, 5  ;;  %v2627_v13 = vld [vmem:[%s3502_s6 + $0xb0] sm:$0xff]  }
 0x10f   : > { %v2208_v23 = vcombine.low %v3176_v2, %v3182_v19  ;;  %v798_v29 = vor.u32 %v797_v22, %v794_v3  ;;  %v2163_v34 = vcombine.low %v2955_v58, %v1057_v39  ;;  %v785_v36 = vrot.slane %v784_v25, 4  ;;  %v2631_v22 = vld [vmem:[%s3502_s6 + $0xa0] sm:$0xff]  }
 0x110   : > { %v2149_v44 = vrot.slane %v3025_v47, 9  ;;  %v1060_v4 = vrot.slane %v3033_v50, 5  ;;  %v2150_v48 = vrot.slane %v2972_v10, 9  ;;  %v1064_v15 = vrot.slane %v3037_v52, 5  ;;  %v2630_v47 = vld [vmem:[%s3502_s6 + $0x98] sm:$0xff]  }
 0x111   : > { %v799_v5 = vrot.slane %v798_v29, 4  ;;  %2449 = vmatpush3.bf16.msra.mxu1 %v2626_v35  ;;  %v2151_v59 = vrot.slane %v2997_v30, 9  ;;  %v1068_v45 = vrot.slane %v3052_v20, 5  ;;  %v3203_v60 = vsel %vm2922_vm9, %v785_v36, %v789_v40  ;;  %2469 = vmatmul.mubr.msk.bf16.vlgmr.msra.gmra.mxu0 %vm864_vm12, %v2184_v51  ;;  %v2629_v20 = vld [vmem:[%s3502_s6 + $0xa8] sm:$0xff]   ;;  %v2646_v36 = vld [vmem:[%s3502_s6 + $0x100] sm:$0xff]  }
 0x112   : > { %2450 = vmatprep.subr.bf16.mxu1 %v2628_v24  ;;  %v1061_v10 = vsel %vm2945_vm13, %v2149_v44, %v1060_v4  ;;  %v2152_v30 = vrot.slane %v3044_v53, 9  ;;  %v1072_v50 = vrot.slane %v3153_v43, 5  ;;  %v3218_v52 = vcombine.low %v3124_v18, %v3203_v60  ;;  %2472 = vmatprep.mubr.msk.bf16.mxu0 %vm864_vm12, %v2185_v21  ;;  %v2637_v29 = vld [vmem:[%s3502_s6 + $0xe8] sm:$0xff]  }
 0x113   : > { %2493 = vmatpush3.bf16.msra.mxu0 %v3086_v38  ;;  %v3224_v56 = vsel %vm2922_vm9, %v799_v5, %v803_v31  ;;  %v1065_v17 = vsel %vm2945_vm13, %v2150_v48, %v1064_v15  ;;  %v2153_v51 = vrot.slane %v3140_v27, 9  ;;  %v2226_v38 = vcombine.low %v1057_v39, %v1061_v10  ;;  %v2632_v39 = vld [vmem:[%s3502_s6 + $0x90] sm:$0xff]   ;;  %v2638_v31 = vld [vmem:[%s3502_s6 + $0xd8] sm:$0xff]   ;;  %v2645_v18 = vld [vmem:[%s3502_s6 + $0x108] sm:$0xff]  }
 0x114   : > { %v3231_v53 = vcombine.low %v3224_v56, %v3176_v2  ;;  %2494 = vmatprep.subr.bf16.mxu0 %v2627_v13  ;;  %v3236_v43 = vcombine.low %v1061_v10, %v1065_v17  ;;  %v1069_v12 = vsel %vm2945_vm13, %v2151_v59, %v1068_v45  ;;  %2424 = vmatprep.mubr.msk.bf16.mxu1 %vm864_vm12, %v3218_v52  ;;  %v1076_v35 = vrot.slane %v3166_v32, 5 }
 0x115   : > { %2451 = vmatpush3.bf16.msra.mxu1 %v2628_v24  ;;  %v1073_v27 = vsel %vm2945_vm13, %v2152_v30, %v1072_v50  ;;  %v2227_v21 = vcombine.low %v1065_v17, %v1069_v12  ;;  %v2154_v61 = vrot.slane %v3008_v37, 9  ;;  %v1080_v49 = vrot.slane %v3063_v62, 5  ;;  %v2636_v24 = vld [vmem:[%s3502_s6 + $0x80] sm:$0xff]  }
 0x116   : > { %2425 = vmatmul.mubr.msk.bf16.gmra.mxu1 %vm864_vm12, %v3231_v53  ;;  %2476 = vmatprep.subr.bf16.mxu1 %v2630_v47  ;;  %v3248_v63 = vcombine.low %v1069_v12, %v1073_v27  ;;  %v2217_v0 = vrot.slane %v3105_v7, 9  ;;  %v1478_v3 = vrot.slane %v3109_v8, 5  ;;  %v1077_v32 = vsel %vm2945_vm13, %v2153_v51, %v1076_v35 }
 0x117   : > { %2452 = vmatprep.mubr.msk.bf16.mxu1 %vm864_vm12, %v2163_v34  ;;  %2495 = vmatpush3.bf16.msra.mxu0 %v2627_v13  ;;  %v2207_v37 = vcombine.low %v3203_v60, %v3224_v56  ;;  %v2228_v25 = vcombine.low %v1073_v27, %v1077_v32  ;;  %v1081_v62 = vsel %vm2945_vm13, %v2154_v61, %v1080_v49  ;;  %v2639_v34 = vld [vmem:[%s3502_s6 + $0xe0] sm:$0xff]  }
 0x118   : > { %2496 = vmatprep.subr.bf16.mxu0 %v2629_v20  ;;  %v3265_v7 = vsel %vm2945_vm13, %v2217_v0, %v1478_v3  ;;  %v3267_v8 = vcombine.low %v1077_v32, %v1081_v62 }
 0x119   : > { %v2229_v40 = vcombine.low %v1081_v62, %v3265_v7  ;;  %2473 = vmatmul.mubr.msk.bf16.gmra.mxu0 %vm864_vm12, %v2186_v42  ;;  %v2635_v42 = vld [vmem:[%s3502_s6 + $0xf0] sm:$0xff]  }
 0x11a   : > { %2500 = vmatprep.mubr.msk.bf16.mxu0 %vm864_vm12, %v2226_v38 }
 0x11b   : > { %2497 = vmatpush3.bf16.msra.mxu0 %v2629_v20 }
 0x11c   : > { %2498 = vmatprep.subr.bf16.mxu0 %v2631_v22 }
 0x11e   : > { %2453 = vmatmul.mubr.msk.bf16.vlgmr.msra.gmra.mxu1 %vm864_vm12, %v3236_v43 }
 0x11f   : > { %2477 = vmatpush3.bf16.msra.mxu1 %v2630_v47  ;;  %2456 = vmatprep.mubr.msk.bf16.mxu1 %vm864_vm12, %v3248_v63 }
 0x120   : > { %2499 = vmatpush3.bf16.msra.mxu0 %v2631_v22  ;;  %2478 = vmatprep.subr.bf16.mxu1 %v2632_v39 }
 0x121   : > { %2524 = vmatprep.subr.bf16.mxu0 %v2633_v55 }
 0x123   : > { %2479 = vmatpush3.bf16.msra.mxu1 %v2632_v39  ;;  %2501 = vmatmul.mubr.msk.bf16.vlgmr.msra.gmra.mxu0 %vm864_vm12, %v2227_v21 }
 0x124   : > { %2504 = vmatprep.mubr.msk.bf16.mxu0 %vm864_vm12, %v2228_v25  ;;  %2525 = vmatpush3.bf16.msra.mxu0 %v2633_v55 }
 0x125   : > { %2480 = vmatprep.subr.bf16.mxu1 %v2634_v28  ;;  %2526 = vmatprep.subr.bf16.mxu0 %v2635_v42 }
 0x126   : > { %2457 = vmatmul.mubr.msk.bf16.gmra.mxu1 %vm864_vm12, %v3267_v8 }
 0x127   : > { %2481 = vmatpush3.bf16.msra.mxu1 %v2634_v28  ;;  %2484 = vmatprep.mubr.msk.bf16.mxu1 %vm864_vm12, %v2205_v9  ;;  %v2642_v9 = vld [vmem:[%s3502_s6 + $0xc8] sm:$0xff]  }
 0x128   : > { %2527 = vmatpush3.bf16.msra.mxu0 %v2635_v42  ;;  %2482 = vmatprep.subr.bf16.mxu1 %v2636_v24 }
 0x129   : > { %2528 = vmatprep.subr.bf16.mxu0 %v2637_v29 }
 0x12b   : > { %2483 = vmatpush3.bf16.msra.mxu1 %v2636_v24  ;;  %2505 = vmatmul.mubr.msk.bf16.gmra.mxu0 %vm864_vm12, %v2229_v40 }
 0x12c   : > { %2529 = vmatpush3.bf16.msra.mxu0 %v2637_v29  ;;  %2532 = vmatprep.mubr.msk.bf16.mxu0 %vm864_vm12, %v3128_v11  ;;  %v2643_v11 = vld [vmem:[%s3502_s6 + $0x110] sm:$0xff]  }
 0x12d   : > { %2508 = vmatprep.subr.bf16.mxu1 %v2638_v31  ;;  %2530 = vmatprep.subr.bf16.mxu0 %v2639_v34 }
 0x12e   : > { %2485 = vmatmul.mubr.msk.bf16.vlgmr.msra.gmra.mxu1 %vm864_vm12, %v2206_v14  ;;  %v2263_v14 = vcombine.low %v3182_v19, %v2929_v16  ;;  %v2246_v16 = vcombine.low %v3069_v1, %v2888_v41 }
 0x12f   : > { %2509 = vmatpush3.bf16.msra.mxu1 %v2638_v31  ;;  %2488 = vmatprep.mubr.msk.bf16.mxu1 %vm864_vm12, %v2207_v37 }
 0x130   : > { %2531 = vmatpush3.bf16.msra.mxu0 %v2639_v34  ;;  %2510 = vmatprep.subr.bf16.mxu1 %v2640_v46 }
 0x131   : > { %2540 = vmatprep.subr.bf16.mxu0 %v2641_v57 }
 0x133   : > { %2511 = vmatpush3.bf16.msra.mxu1 %v2640_v46  ;;  %2533 = vmatmul.mubr.msk.bf16.vlgmr.msra.gmra.mxu0 %vm864_vm12, %v3218_v52 }
 0x134   : > { %2536 = vmatprep.mubr.msk.bf16.mxu0 %vm864_vm12, %v3231_v53  ;;  %2541 = vmatpush3.bf16.msra.mxu0 %v2641_v57 }
 0x135   : > { %2512 = vmatprep.subr.bf16.mxu1 %v2642_v9  ;;  %2542 = vmatprep.subr.bf16.mxu0 %v2643_v11 }
 0x136   : > { %2489 = vmatmul.mubr.msk.bf16.gmra.mxu1 %vm864_vm12, %v2208_v23 }
 0x137   : > { %2513 = vmatpush3.bf16.msra.mxu1 %v2642_v9  ;;  %2516 = vmatprep.mubr.msk.bf16.mxu1 %vm864_vm12, %v2991_v26  ;;  %v2280_v26 = vcombine.low %v3265_v7, %v2955_v58 }
 0x138   : > { %2543 = vmatpush3.bf16.msra.mxu0 %v2643_v11  ;;  %2514 = vmatprep.subr.bf16.mxu1 %v2644_v6 }
 0x139   : > { %2544 = vmatprep.subr.bf16.mxu0 %v2645_v18 }
 0x13b   : > { %2515 = vmatpush3.bf16.msra.mxu1 %v2644_v6  ;;  %2537 = vmatmul.mubr.msk.bf16.gmra.mxu0 %vm864_vm12, %v2263_v14 }
 0x13c   : > { %2545 = vmatpush3.bf16.msra.mxu0 %v2645_v18  ;;  %2548 = vmatprep.mubr.msk.bf16.mxu0 %vm864_vm12, %v3236_v43 }
 0x13d   : > { %2556 = vmatprep.subr.bf16.mxu1 %v2641_v57  ;;  %2546 = vmatprep.subr.bf16.mxu0 %v2646_v36 }
 0x13e   : > { %2517 = vmatmul.mubr.msk.bf16.vlgmr.msra.gmra.mxu1 %vm864_vm12, %v3048_v54 }
 0x13f   : > { %2560 = vmatpush3.bf16.msra.mxu1 %v2641_v57  ;;  %2520 = vmatprep.mubr.msk.bf16.mxu1 %vm864_vm12, %v3144_v33 }
 0x140   : > { %2547 = vmatpush3.bf16.msra.mxu0 %v2646_v36  ;;  %2557 = vmatprep.subr.bf16.mxu1 %v2643_v11 }
 0x143   : > { %2561 = vmatpush3.bf16.msra.mxu1 %v2643_v11  ;;  %2549 = vmatmul.mubr.msk.bf16.vlgmr.msra.gmra.mxu0 %vm864_vm12, %v3248_v63 }
 0x144   : > { %2558 = vmatprep.subr.bf16.mxu1 %v2645_v18 }
 0x146   : > { %2521 = vmatmul.mubr.msk.bf16.gmra.mxu1 %vm864_vm12, %v2246_v16 }
 0x147   : > { %2562 = vmatpush3.bf16.msra.mxu1 %v2645_v18  ;;  %2552 = vmatprep.mubr.msk.bf16.mxu1 %vm864_vm12, %v3267_v8 }
 0x148   : > { %2559 = vmatprep.subr.bf16.mxu1 %v2646_v36 }
 0x14b   : > { %2563 = vmatpush3.bf16.msra.mxu1 %v2646_v36 }
 0x14e   : > { %2553 = vmatmul.mubr.msk.bf16.vlgmr.msra.gmra.mxu1 %vm864_vm12, %v2280_v26 }
 0x1b5   : > { %v2438_v54 = vpop.f32.mrf.mxu0 }
 0x1b7   : > { %v1016_v33 = vpop.f32.mrf.mxu0 }
 0x1b9   : > { %v2439_v2 = vpop.f32.mrf.mxu0 }
 0x1bb   : > { %v1019_v19 = vpop.f32.mrf.mxu0 }
 0x1c8   : > { %v2422_v23 = vpop.f32.mrf.mxu1 }
 0x1c9   : > { %v2442_v13 = vpop.f32.mrf.mxu0  ;;  %v1025_v25 = vadd.f32 %v2438_v54, %v2422_v23 }
 0x1ca   : > { %v911_v41 = vpop.f32.mrf.mxu1 }
 0x1cb   : > { %v1032_v1 = vpop.f32.mrf.mxu0  ;;  %v1017_v8 = vadd.f32 %v1016_v33, %v911_v41 }
 0x1cc   : > { %v2423_v4 = vpop.f32.mrf.mxu1 }
 0x1cd   : > { %v3369_v44 = vpop.f32.mrf.mxu0  ;;  %v1028_v28 = vadd.f32 %v2439_v2, %v2423_v4 }
 0x1ce   : > { %v914_v15 = vpop.f32.mrf.mxu1 }
 0x1cf   : > { %v3371_v48 = vpop.f32.mrf.mxu0  ;;  %v1020_v31 = vadd.f32 %v1019_v19, %v914_v15 }
 0x1d1   : > { %v2470_v5 = vpop.f32.mrf.mxu0 }
 0x1d3   : > { %v1297_v59 = vpop.f32.mrf.mxu0 }
 0x1d5   : > { %v2471_v58 = vpop.f32.mrf.mxu0 }
 0x1d6   : > { %v2426_v45 = vpop.f32.mrf.mxu1 }
 0x1d7   : > { %v1300_v10 = vpop.f32.mrf.mxu0  ;;  %v1041_v36 = vadd.f32 %v2442_v13, %v2426_v45 }
 0x1d8   : > { %v927_v60 = vpop.f32.mrf.mxu1 }
 0x1d9   : > { %v2474_v30 = vpop.f32.mrf.mxu0  ;;  %v1033_v23 = vadd.f32 %v1032_v1, %v927_v60 }
 0x1da   : > { %v2427_v47 = vpop.f32.mrf.mxu1 }
 0x1db   : > { %v3373_v52 = vpop.f32.mrf.mxu0 }
 0x1dc   : > { %v930_v50 = vpop.f32.mrf.mxu1 }
 0x1dd   : > { %v3375_v17 = vpop.f32.mrf.mxu0 }
 0x1de   : > { %v2454_v56 = vpop.f32.mrf.mxu1 }
 0x1df   : > { %v3377_v53 = vpop.f32.mrf.mxu0  ;;  %v1206_v40 = vadd.f32 %v2454_v56, %v1025_v25 }
 0x1e0   : > { %v1173_v51 = vpop.f32.mrf.mxu1 }
 0x1e1   : > { %v1204_v42 = vadd.f32 %v1173_v51, %v1017_v8  ;;  %v1330_v46 = vadd.f32 %v2470_v5, %v1206_v40 }
 0x1e2   : > { %v2455_v20 = vpop.f32.mrf.mxu1 }
 0x1e3   : > { %v2502_v43 = vpop.f32.mrf.mxu0  ;;  %v1207_v34 = vadd.f32 %v2455_v20, %v1028_v28  ;;  %v1328_v18 = vadd.f32 %v1297_v59, %v1204_v42  ;;  %v1044_v59 = vadd.f32 %v3369_v44, %v2427_v47 }
 0x1e4   : > { %v1176_v38 = vpop.f32.mrf.mxu1 }
 0x1e5   : > { %v1564_v12 = vpop.f32.mrf.mxu0  ;;  %v1205_v11 = vadd.f32 %v1176_v38, %v1020_v31  ;;  %v1331_v54 = vadd.f32 %v2471_v58, %v1207_v34  ;;  %v1036_v38 = vadd.f32 %v3371_v48, %v930_v50  ;;  %v3404_v48 = vld [vmem:[%s3503_s7] ss:$0 sm:$0xff] }
 0x1e6   : > { %v2458_v27 = vpop.f32.mrf.mxu1 }
 0x1e7   : > { %v2503_v21 = vpop.f32.mrf.mxu0  ;;  %v1210_v2 = vadd.f32 %v2458_v27, %v1041_v36  ;;  %v1329_v56 = vadd.f32 %v1300_v10, %v1205_v11 }
 0x1e8   : > { %v1189_v35 = vpop.f32.mrf.mxu1 }
 0x1e9   : > { %v3379_v61 = vpop.f32.mrf.mxu0  ;;  %v1208_v15 = vadd.f32 %v1189_v35, %v1033_v23  ;;  %v1334_v1 = vadd.f32 %v2474_v30, %v1210_v2 }
 0x1ea   : > { %v2459_v63 = vpop.f32.mrf.mxu1 }
 0x1eb   : > { %v3381_v49 = vpop.f32.mrf.mxu0  ;;  %v1211_v27 = vadd.f32 %v2459_v63, %v1044_v59  ;;  %v1332_v44 = vadd.f32 %v3373_v52, %v1208_v15 }
 0x1ec   : > { %v1192_v0 = vpop.f32.mrf.mxu1 }
 0x1ed   : > { %v3383_v3 = vpop.f32.mrf.mxu0  ;;  %v1209_v35 = vadd.f32 %v1192_v0, %v1036_v38  ;;  %v1335_v0 = vadd.f32 %v3375_v17, %v1211_v27 }
 0x1ee   : > { %v2486_v32 = vpop.f32.mrf.mxu1 }
 0x1ef   : > { %v3385_v37 = vpop.f32.mrf.mxu0  ;;  %v1470_v6 = vadd.f32 %v2486_v32, %v1330_v46  ;;  %v1333_v31 = vadd.f32 %v3377_v53, %v1209_v35 }
 0x1f0   : > { %v1437_v22 = vpop.f32.mrf.mxu1 }
 0x1f1   : > { %v3387_v62 = vpop.f32.mrf.mxu0  ;;  %v1468_v26 = vadd.f32 %v1437_v22, %v1328_v18  ;;  %v1597_v5 = vadd.f32 %v2502_v43, %v1470_v6 }
 0x1f2   : > { %v2487_v7 = vpop.f32.mrf.mxu1 }
 0x1f3   : > { %v2534_v39 = vpop.f32.mrf.mxu0  ;;  %v1471_v4 = vadd.f32 %v2487_v7, %v1331_v54  ;;  %v1595_v58 = vadd.f32 %v1564_v12, %v1468_v26 }
 0x1f4   : > { %v1440_v55 = vpop.f32.mrf.mxu1 }
 0x1f5   : > { %v1784_v24 = vpop.f32.mrf.mxu0  ;;  %v1469_v20 = vadd.f32 %v1440_v55, %v1329_v56  ;;  %v1598_v22 = vadd.f32 %v2503_v21, %v1471_v4 }
 0x1f6   : > { %v2490_v29 = vpop.f32.mrf.mxu1 }
 0x1f7   : > { %v2535_v57 = vpop.f32.mrf.mxu0  ;;  %v1474_v25 = vadd.f32 %v2490_v29, %v1334_v1  ;;  %v1596_v30 = vadd.f32 %v3379_v61, %v1469_v20 }
 0x1f8   : > { %v1453_v9 = vpop.f32.mrf.mxu1 }
 0x1f9   : > { %v1787_v14 = vpop.f32.mrf.mxu0  ;;  %v1472_v63 = vadd.f32 %v1453_v9, %v1332_v44  ;;  %v1601_v61 = vadd.f32 %v3381_v49, %v1474_v25 }
 0x1fa   : > { %v2491_v16 = vpop.f32.mrf.mxu1 }
 0x1fb   : > { %v3389_v33 = vpop.f32.mrf.mxu0  ;;  %v1475_v29 = vadd.f32 %v2491_v16, %v1335_v0 }
 0x1fc   : > { %v1456_v41 = vpop.f32.mrf.mxu1 }
 0x1fd   : > { %v3391_v19 = vpop.f32.mrf.mxu0  ;;  %v1473_v17 = vadd.f32 %v1456_v41, %v1333_v31  ;;  %v1602_v54 = vadd.f32 %v3385_v37, %v1475_v29 }
 0x1fe   : > { %v2518_v51 = vpop.f32.mrf.mxu1 }
 0x1ff   : > { %v1707_v13 = vadd.f32 %v2518_v51, %v1597_v5  ;;  %v3394_v45 = vpop.f32.mrf.mxu0  ;;  %v1600_v4 = vadd.f32 %v3387_v62, %v1473_v17 }
 0x200   : > { %v1674_v60 = vpop.f32.mrf.mxu1 }
 0x201   : > { %v1705_v10 = vadd.f32 %v1674_v60, %v1595_v58  ;;  %v3397_v32 = vpop.f32.mrf.mxu0  ;;  %v1817_v43 = vadd.f32 %v2534_v39, %v1707_v13 }
 0x202   : > { %v2519_v47 = vpop.f32.mrf.mxu1 }
 0x203   : > { %v1708_v7 = vadd.f32 %v2519_v47, %v1598_v22  ;;  %v2550_v8 = vpop.f32.mrf.mxu0  ;;  %v1815_v50 = vadd.f32 %v1784_v24, %v1705_v10 }
 0x204   : > { %v1927_v12 = vadd.f32 %v2550_v8, %v1817_v43  ;;  %v1677_v21 = vpop.f32.mrf.mxu1 }
 0x205   : > { %v1706_v52 = vadd.f32 %v1677_v21, %v1596_v30  ;;  %v1894_v40 = vpop.f32.mrf.mxu0  ;;  %v1818_v39 = vadd.f32 %v2535_v57, %v1708_v7  ;;  %v1599_v57 = vadd.f32 %v3383_v3, %v1472_v63 }
 0x206   : > { %v1942_v55 = vadd.f32 %v3404_v48, %v1927_v12  ;;  %v1925_v28 = vadd.f32 %v1894_v40, %v1815_v50  ;;  %v2522_v42 = vpop.f32.mrf.mxu1 }
 0x207   : > { %v2551_v24 = vpop.f32.mrf.mxu0  ;;  %v1816_v34 = vadd.f32 %v1787_v14, %v1706_v52  ;;  %v1711_v18 = vadd.f32 %v2522_v42, %v1601_v61 }
 0x208   : > { %v1950_v46 = vmax.f32 %v1942_v55, 0.0  ;;  %v1940_v11 = vadd.f32 %v3404_v48, %v1925_v28  ;;  %v1928_v9 = vadd.f32 %v2551_v24, %v1818_v39  ;;  %v1690_v6 = vpop.f32.mrf.mxu1 }
 0x209   : > { %v1897_v36 = vpop.f32.mrf.mxu0  ;;  %v1709_v26 = vadd.f32 %v1690_v6, %v1599_v57  ;;  %v1821_v56 = vadd.f32 %v3389_v33, %v1711_v18 }
 0x20a   : > { %1958 = vst.msk [vmem:[%s3415_s22 + $0x10] sm:$0xff] %vm864_vm12, %v1950_v46  ;;  %v1948_v53 = vmax.f32 %v1940_v11, 0.0  ;;  %v1943_v49 = vadd.f32 %v3404_v48, %v1928_v9  ;;  %v1926_v14 = vadd.f32 %v1897_v36, %v1816_v34  ;;  %v2523_v16 = vpop.f32.mrf.mxu1 }
 0x20b   : > { %v1712_v41 = vadd.f32 %v2523_v16, %v1602_v54  ;;  %v1819_v37 = vadd.f32 %v3391_v19, %v1709_v26 }
 0x20c   : > { %1956 = vst.msk [vmem:[%s3415_s22] sm:$0xff] %vm864_vm12, %v1948_v53  ;;  %v1951_v3 = vmax.f32 %v1943_v49, 0.0  ;;  %v1941_v23 = vadd.f32 %v3404_v48, %v1926_v14  ;;  %v1693_v2 = vpop.f32.mrf.mxu1 }
 0x20d   : > { %v1710_v51 = vadd.f32 %v1693_v2, %v1600_v4  ;;  %v1822_v33 = vadd.f32 %v3394_v45, %v1712_v41 }
 0x20e   : > { %1959 = vst.msk [vmem:[%s3415_s22 + $0x18] sm:$0xff] %vm864_vm12, %v1951_v3  ;;  %v1949_v5 = vmax.f32 %v1941_v23, 0.0  ;;  %v2554_v15 = vpop.f32.mrf.mxu1 }
 0x20f   : > { %v1931_v59 = vadd.f32 %v2554_v15, %v1821_v56  ;;  %v1820_v19 = vadd.f32 %v3397_v32, %v1710_v51 }
 0x210   : > { %1957 = vst.msk [vmem:[%s3415_s22 + $0x8] sm:$0xff] %vm864_vm12, %v1949_v5  ;;  %v1910_v20 = vpop.f32.mrf.mxu1 }
 0x211   : > { %v1946_v13 = vadd.f32 %v3404_v48, %v1931_v59  ;;  %v1929_v62 = vadd.f32 %v1910_v20, %v1819_v37 }
 0x212   : > { %v2555_v58 = vpop.f32.mrf.mxu1 }
 0x213   : > { %v1954_v38 = vmax.f32 %v1946_v13, 0.0  ;;  %v1944_v1 = vadd.f32 %v3404_v48, %v1929_v62  ;;  %v1932_v60 = vadd.f32 %v2555_v58, %v1822_v33 }
 0x214   : > { %v1913_v27 = vpop.f32.mrf.mxu1 }
 0x215   : > { %1962 = vst.msk [vmem:[%s3415_s22 + $0x30] sm:$0xff] %vm864_vm12, %v1954_v38  ;;  %v1952_v10 = vmax.f32 %v1944_v1, 0.0  ;;  %v1947_v22 = vadd.f32 %v3404_v48, %v1932_v60  ;;  %v1930_v43 = vadd.f32 %v1913_v27, %v1820_v19 }
 0x217   : > { %1960 = vst.msk [vmem:[%s3415_s22 + $0x20] sm:$0xff] %vm864_vm12, %v1952_v10  ;;  %v1955_v45 = vmax.f32 %v1947_v22, 0.0  ;;  %v1945_v35 = vadd.f32 %v3404_v48, %v1930_v43 }
 0x219   : > { %1963 = vst.msk [vmem:[%s3415_s22 + $0x38] sm:$0xff] %vm864_vm12, %v1955_v45  ;;  %v1953_v32 = vmax.f32 %v1945_v35, 0.0 }
 0x21b   : > { %1961 = vst.msk [vmem:[%s3415_s22 + $0x28] sm:$0xff] %vm864_vm12, %v1953_v32 }
 0x21c   : > { %2660 = shalt.err (!%p2657_p3)
}
 0x21d   : > { %s2661_s19 = scalar_lea.hbm %s3446_s10, 1024  ;;  %s2665_s22 = scalar_lea.hbm %s3504_s8, 2048 }
 0x21e   : > { %p2662_p4 = scmp.ne.s32.totalorder %s3446_s10, %s2661_s19  ;;  %p2666_p9 = scmp.lt.s32.totalorder %s3446_s10, %s3504_s8 }
 0x21f   : > { %p2667_p10 = scmp.lt.s32.totalorder %s2665_s22, %s2661_s19 }
 0x220   : > { %p2663_p7 = pnand %p2662_p4, %p2796_p5 }
 0x221   : > { %p2668_p11 = por %p2667_p10, %p2666_p9 }
 0x222   : > { %p2664_p8 = pneg %p2663_p7 }
 0x224   : > { %p2669_p12 = pnand %p2668_p11, %p2664_p8 }
 0x226   : > { %2672 = shalt.err (!%p2669_p12)
}
 0x227   : > { %s2711_s26 = smov 128   ;;  %s2712_s12 = smov 8  }
 0x228   : > { %2564 = dma.vmem_to_hbm [thread:$0]  (%p2796_p5), %s3448_s24, 1024, %s3446_s10, %s3456_s9, %s2711_s26, %s2711_s26, %s2712_s12  }
 0x229 PF: > { %p2570_p13 = scmp.ge.s32.totalorder %s2707_s30, 2  ;;  %s1993_s13 = sand.u32 1, %s2695_s27  }
 0x22a   : > { %s1994_s17 = scalar_lea.sflag [#allocation3], %s1993_s13 }
 0x22b   : > { %p2567_p0 = pnand %p2570_p13, %p2800_p6 }
 0x22d   : > { %p2568_p1 = pneg %p2567_p0 }
 0x22f   : > { %2690 = dma.done.wait (%p2568_p1), %s1994_s17, 1024  }
 0x230   : > { %2692 = vsyncadd (%p2568_p1), %s1994_s17, 4294966272  ;;  %p18_p2 = scmp.ge.s32.totalorder %s2783_s11, 4   ;;  %s3515_s27 = smov %s2699_s28 }
 0x231   : > { %s3516_s28 = smov %s2703_s29  ;;  %s3517_s29 = smov %s2794_s14 }
 0x232   : > { %s3518_s30 = smov %s2783_s11  ;;  %20 = sbr.rel (!%p18_p2) target bundleno = 3 (0x3), region = 104 }
 0x237   :  { %1999 = vsyncpa [#allocation3], 1 }
 0x238   :  { %2001 = vsyncpa [#allocation3 + $0x1], 1 }

</bundles_post_ra>
